<compile_context>
chip_gen: v7x
topology: tpu7x:2x2x1
jax: 0.10.0
libtpu: 0.0.40
codegen_flags: <defaults>
</compile_context>

<pallas_src>
import functools

import jax
import jax.numpy as jnp
from jax.experimental import pallas as pl
from jax.experimental.pallas import tpu as pltpu


def _lstm_kernel(x_ref,       # [T*B, D]   time-major input, flattened over (T, B)
                 wih1_ref,    # [D, 4H]    layer-1 input weights (transposed)
                 whh1_ref,    # [H, 4H]    layer-1 recurrent weights (transposed)
                 b1_ref,      # [1, 4H]    layer-1 bias (b_ih + b_hh)
                 w2_ref,      # [2H, 4H]   layer-2 stacked [w_ih2^T ; w_hh2^T]
                 b2_ref,      # [1, 4H]    layer-2 bias (b_ih + b_hh)
                 wfc_ref,     # [1, H]     fc_out weight (row)
                 bfc_ref,     # [1, 1]     fc_out bias
                 out_ref,     # [B, 128]   lane-dense output (wrapper takes col 0)
                 *, T, B):
    H = whh1_ref.shape[0]
    H4 = 4 * H

    whh1 = whh1_ref[...]
    w2 = w2_ref[...]

    # One batched MXU matmul for every layer-1 input projection (M = T*B),
    # with the layer-1 bias broadcast emitted exactly once and folded in.
    xproj = (jnp.dot(x_ref[...], wih1_ref[...], preferred_element_type=jnp.float32)
             + jnp.broadcast_to(b1_ref[...], (T * B, H4)))          # [T*B, 4H]

    # Hoist the layer-2 bias broadcast out of the unrolled loop.
    b2_b = jnp.broadcast_to(b2_ref[...], (B, H4))

    def activate(gates, c):
        # Full-vreg transcendentals: one sigmoid + one tanh on the whole
        # [B, 4H] tile (exactly one vreg at B=8, H=32), then slice bands.
        # PyTorch gate order: [i | f | g | o].
        sig = jax.nn.sigmoid(gates)
        th = jnp.tanh(gates)
        i = sig[:, 0 * H:1 * H]
        f = sig[:, 1 * H:2 * H]
        g = th[:, 2 * H:3 * H]
        o = sig[:, 3 * H:4 * H]
        c_new = f * c + i * g
        h_new = o * jnp.tanh(c_new)
        return h_new, c_new

    h1 = jnp.zeros((B, H), jnp.float32)
    c1 = jnp.zeros((B, H), jnp.float32)
    h2 = jnp.zeros((B, H), jnp.float32)
    c2 = jnp.zeros((B, H), jnp.float32)

    # T is small and static -> unrolled python loop (traced once).
    for t in range(T):
        # Layer 1: only the recurrent matmul remains per step.
        g1 = (xproj[t * B:(t + 1) * B, :]
              + jnp.dot(h1, whh1, preferred_element_type=jnp.float32))
        h1, c1 = activate(g1, c1)

        # Layer 2: single fused K=2H matmul  [h1 | h2] @ [w_ih2^T ; w_hh2^T].
        hcat = jnp.concatenate([h1, h2], axis=-1)                    # [B, 2H]
        g2 = jnp.dot(hcat, w2, preferred_element_type=jnp.float32) + b2_b
        h2, c2 = activate(g2, c2)

    # Head: VPU multiply + lane reduction instead of an N=1 MXU matmul.
    y = jnp.sum(h2 * wfc_ref[...], axis=-1, keepdims=True) + bfc_ref[...]   # [B, 1]

    # Lane-dense (unmasked) store; the wrapper slices column 0.
    out_ref[...] = jnp.broadcast_to(y, out_ref.shape).astype(out_ref.dtype)


def lstm_model_forward(x, params, d_feat):
    """x: [B, d_feat * T]  ->  [B] (matches LSTMModel.forward)."""
    B = x.shape[0]
    # reshape [B, d_feat, T] then permute to [B, T, d_feat]
    x3 = x.reshape(B, d_feat, -1).transpose(0, 2, 1)
    T = x3.shape[1]
    # kernel wants time-major, flattened over (T, B): [T*B, D]
    x_tm = x3.transpose(1, 0, 2).reshape(T * B, d_feat)

    vmem = pl.BlockSpec(memory_space=pltpu.MemorySpace.VMEM)
    out = pl.pallas_call(
        functools.partial(_lstm_kernel, T=T, B=B),
        out_shape=jax.ShapeDtypeStruct((B, 128), jnp.float32),
        in_specs=[vmem] * 8,
        out_specs=vmem,
    )(x_tm,
      params["wih1"], params["whh1"], params["b1"],
      params["w2"], params["b2"],
      params["wfc"], params["bfc"])
    return out[:, 0]  # .squeeze() (for B > 1)


def init_params(key, d_feat, hidden_size):
    """Deterministic init mimicking PyTorch's U(-1/sqrt(H), 1/sqrt(H))."""
    H = hidden_size
    k = 1.0 / jnp.sqrt(jnp.float32(H))
    keys = jax.random.split(key, 10)

    def u(kk, shape):
        return jax.random.uniform(kk, shape, jnp.float32, -k, k)

    # LSTM layer 1 (input D -> H), layer 2 (input H -> H); gate order i,f,g,o.
    w_ih1 = u(keys[0], (4 * H, d_feat))
    w_hh1 = u(keys[1], (4 * H, H))
    b_ih1 = u(keys[2], (4 * H,))
    b_hh1 = u(keys[3], (4 * H,))
    w_ih2 = u(keys[4], (4 * H, H))
    w_hh2 = u(keys[5], (4 * H, H))
    b_ih2 = u(keys[6], (4 * H,))
    b_hh2 = u(keys[7], (4 * H,))
    # fc_out: Linear(H, 1)
    w_fc = jax.random.uniform(keys[8], (1, H), jnp.float32, -k, k)
    b_fc = jax.random.uniform(keys[9], (1,), jnp.float32, -k, k)

    # Pre-transpose / stack / fold biases for the kernel layout.
    return dict(
        wih1=w_ih1.T,                                         # [D, 4H]
        whh1=w_hh1.T,                                         # [H, 4H]
        b1=(b_ih1 + b_hh1)[None, :],                          # [1, 4H]
        w2=jnp.concatenate([w_ih2.T, w_hh2.T], axis=0),       # [2H, 4H]
        b2=(b_ih2 + b_hh2)[None, :],                          # [1, 4H]
        wfc=w_fc,                                             # [1, H]
        bfc=b_fc[None, :],                                    # [1, 1]
    )


def reference_forward(x, params, d_feat):
    """Pure-JAX reference of the PyTorch math (for sanity check)."""
    B = x.shape[0]
    xs = x.reshape(B, d_feat, -1).transpose(0, 2, 1)          # [B, T, D]
    T = xs.shape[1]
    H = params["whh1"].shape[0]
    wih2 = params["w2"][:H]                                   # [H, 4H]
    whh2 = params["w2"][H:]                                   # [H, 4H]

    def cell(x_t, h, c, w_ih, w_hh, b):
        g = x_t @ w_ih + h @ w_hh + b
        i = jax.nn.sigmoid(g[:, 0 * H:1 * H])
        f = jax.nn.sigmoid(g[:, 1 * H:2 * H])
        gg = jnp.tanh(g[:, 2 * H:3 * H])
        o = jax.nn.sigmoid(g[:, 3 * H:4 * H])
        c = f * c + i * gg
        h = o * jnp.tanh(c)
        return h, c

    h1 = c1 = h2 = c2 = jnp.zeros((B, H), jnp.float32)
    for t in range(T):
        h1, c1 = cell(xs[:, t, :], h1, c1, params["wih1"], params["whh1"], params["b1"])
        h2, c2 = cell(h1, h2, c2, wih2, whh2, params["b2"])
    return (h2 @ params["wfc"].T + params["bfc"])[:, 0]


if __name__ == "__main__":
    # Small, MXU/vreg-friendly sizes: B=8 batch, D=16 features, T=8 steps, H=32 hidden.
    B, D_FEAT, T, HIDDEN = 8, 16, 8, 32

    key = jax.random.PRNGKey(0)
    kx, kp = jax.random.split(key)
    x = jax.random.normal(kx, (B, D_FEAT * T), jnp.float32)   # module input [B, d_feat*T]
    params = init_params(kp, D_FEAT, HIDDEN)

    fwd = jax.jit(functools.partial(lstm_model_forward, d_feat=D_FEAT))
    y = fwd(x, params)
    jax.block_until_ready(y)

    y_ref = reference_forward(x, params, D_FEAT)
    assert y.shape == (B,)
    assert jnp.allclose(y, y_ref, rtol=1e-4, atol=1e-4), "mismatch vs reference"

    print("KERNEL_OK")
</pallas_src>

<mosaic_0001>
module attributes {stable_mosaic.version = 11 : i64} {
  func.func @_lstm_kernel(%arg0: memref<64x16xf32, #tpu.memory_space<vmem>>, %arg1: memref<16x128xf32, #tpu.memory_space<vmem>>, %arg2: memref<32x128xf32, #tpu.memory_space<vmem>>, %arg3: memref<1x128xf32, #tpu.memory_space<vmem>>, %arg4: memref<64x128xf32, #tpu.memory_space<vmem>>, %arg5: memref<1x128xf32, #tpu.memory_space<vmem>>, %arg6: memref<1x32xf32, #tpu.memory_space<vmem>>, %arg7: memref<1x1xf32, #tpu.memory_space<vmem>>, %arg8: memref<8x128xf32, #tpu.memory_space<vmem>>) attributes {dimension_semantics = [], scalar_prefetch = 0 : i64, scratch_operands = 0 : i64, tpu.core_type = #tpu.core_type<tc>} {
    %c0 = arith.constant 0 : index
    %c0_0 = arith.constant 0 : index
    %0 = vector.load %arg2[%c0, %c0_0] : memref<32x128xf32, #tpu.memory_space<vmem>>, vector<32x128xf32>
    %c0_1 = arith.constant 0 : index
    %c0_2 = arith.constant 0 : index
    %1 = vector.load %arg4[%c0_1, %c0_2] : memref<64x128xf32, #tpu.memory_space<vmem>>, vector<64x128xf32>
    %c0_3 = arith.constant 0 : index
    %c0_4 = arith.constant 0 : index
    %2 = vector.load %arg0[%c0_3, %c0_4] : memref<64x16xf32, #tpu.memory_space<vmem>>, vector<64x16xf32>
    %c0_5 = arith.constant 0 : index
    %c0_6 = arith.constant 0 : index
    %3 = vector.load %arg1[%c0_5, %c0_6] : memref<16x128xf32, #tpu.memory_space<vmem>>, vector<16x128xf32>
    %cst = arith.constant dense<0.000000e+00> : vector<64x128xf32>
    %4 = tpu.matmul %2, %3, %cst {dimension_numbers = #tpu.dot_dimension_numbers<[1], [0], [0], [1], [0, 0, 1, 1], [], []>} : vector<64x16xf32>, vector<16x128xf32>, vector<64x128xf32> -> vector<64x128xf32>
    %c0_7 = arith.constant 0 : index
    %c0_8 = arith.constant 0 : index
    %5 = vector.load %arg3[%c0_7, %c0_8] : memref<1x128xf32, #tpu.memory_space<vmem>>, vector<1x128xf32>
    %6 = vector.shape_cast %5 : vector<1x128xf32> to vector<1x128xf32>
    %7 = vector.broadcast %6 : vector<1x128xf32> to vector<64x128xf32>
    %8 = arith.addf %4, %7 : vector<64x128xf32>
    %c0_9 = arith.constant 0 : index
    %c0_10 = arith.constant 0 : index
    %9 = vector.load %arg5[%c0_9, %c0_10] : memref<1x128xf32, #tpu.memory_space<vmem>>, vector<1x128xf32>
    %10 = vector.shape_cast %9 : vector<1x128xf32> to vector<1x128xf32>
    %11 = vector.broadcast %10 : vector<1x128xf32> to vector<8x128xf32>
    %cst_11 = arith.constant 0.000000e+00 : f32
    %12 = vector.broadcast %cst_11 : f32 to vector<8x32xf32>
    %cst_12 = arith.constant 0.000000e+00 : f32
    %13 = vector.broadcast %cst_12 : f32 to vector<8x32xf32>
    %cst_13 = arith.constant 0.000000e+00 : f32
    %14 = vector.broadcast %cst_13 : f32 to vector<8x32xf32>
    %cst_14 = arith.constant 0.000000e+00 : f32
    %15 = vector.broadcast %cst_14 : f32 to vector<8x32xf32>
    %16 = vector.extract_strided_slice %8 {offsets = [0, 0], sizes = [8, 128], strides = [1, 1]} : vector<64x128xf32> to vector<8x128xf32>
    %cst_15 = arith.constant dense<0.000000e+00> : vector<8x128xf32>
    %17 = tpu.matmul %12, %0, %cst_15 {dimension_numbers = #tpu.dot_dimension_numbers<[1], [0], [0], [1], [0, 0, 1, 1], [], []>} : vector<8x32xf32>, vector<32x128xf32>, vector<8x128xf32> -> vector<8x128xf32>
    %18 = arith.addf %16, %17 : vector<8x128xf32>
    %19 = arith.negf %18 : vector<8x128xf32>
    %20 = math.exp %19 : vector<8x128xf32>
    %cst_16 = arith.constant 1.000000e+00 : f32
    %21 = vector.broadcast %cst_16 : f32 to vector<8x128xf32>
    %22 = arith.addf %21, %20 : vector<8x128xf32>
    %23 = arith.divf %21, %22 : vector<8x128xf32>
    %24 = math.tanh %18 : vector<8x128xf32>
    %25 = vector.extract_strided_slice %23 {offsets = [0, 0], sizes = [8, 32], strides = [1, 1]} : vector<8x128xf32> to vector<8x32xf32>
    %26 = vector.extract_strided_slice %23 {offsets = [0, 32], sizes = [8, 32], strides = [1, 1]} : vector<8x128xf32> to vector<8x32xf32>
    %27 = vector.extract_strided_slice %24 {offsets = [0, 64], sizes = [8, 32], strides = [1, 1]} : vector<8x128xf32> to vector<8x32xf32>
    %28 = vector.extract_strided_slice %23 {offsets = [0, 96], sizes = [8, 32], strides = [1, 1]} : vector<8x128xf32> to vector<8x32xf32>
    %29 = arith.mulf %26, %13 : vector<8x32xf32>
    %30 = arith.mulf %25, %27 : vector<8x32xf32>
    %31 = arith.addf %29, %30 : vector<8x32xf32>
    %32 = math.tanh %31 : vector<8x32xf32>
    %33 = arith.mulf %28, %32 : vector<8x32xf32>
    %34 = tpu.concatenate %33, %14 in 1 : vector<8x32xf32>, vector<8x32xf32> -> vector<8x64xf32>
    %cst_17 = arith.constant dense<0.000000e+00> : vector<8x128xf32>
    %35 = tpu.matmul %34, %1, %cst_17 {dimension_numbers = #tpu.dot_dimension_numbers<[1], [0], [0], [1], [0, 0, 1, 1], [], []>} : vector<8x64xf32>, vector<64x128xf32>, vector<8x128xf32> -> vector<8x128xf32>
    %36 = arith.addf %35, %11 : vector<8x128xf32>
    %37 = arith.negf %36 : vector<8x128xf32>
    %38 = math.exp %37 : vector<8x128xf32>
    %cst_18 = arith.constant 1.000000e+00 : f32
    %39 = vector.broadcast %cst_18 : f32 to vector<8x128xf32>
    %40 = arith.addf %39, %38 : vector<8x128xf32>
    %41 = arith.divf %39, %40 : vector<8x128xf32>
    %42 = math.tanh %36 : vector<8x128xf32>
    %43 = vector.extract_strided_slice %41 {offsets = [0, 0], sizes = [8, 32], strides = [1, 1]} : vector<8x128xf32> to vector<8x32xf32>
    %44 = vector.extract_strided_slice %41 {offsets = [0, 32], sizes = [8, 32], strides = [1, 1]} : vector<8x128xf32> to vector<8x32xf32>
    %45 = vector.extract_strided_slice %42 {offsets = [0, 64], sizes = [8, 32], strides = [1, 1]} : vector<8x128xf32> to vector<8x32xf32>
    %46 = vector.extract_strided_slice %41 {offsets = [0, 96], sizes = [8, 32], strides = [1, 1]} : vector<8x128xf32> to vector<8x32xf32>
    %47 = arith.mulf %44, %15 : vector<8x32xf32>
    %48 = arith.mulf %43, %45 : vector<8x32xf32>
    %49 = arith.addf %47, %48 : vector<8x32xf32>
    %50 = math.tanh %49 : vector<8x32xf32>
    %51 = arith.mulf %46, %50 : vector<8x32xf32>
    %52 = vector.extract_strided_slice %8 {offsets = [8, 0], sizes = [8, 128], strides = [1, 1]} : vector<64x128xf32> to vector<8x128xf32>
    %cst_19 = arith.constant dense<0.000000e+00> : vector<8x128xf32>
    %53 = tpu.matmul %33, %0, %cst_19 {dimension_numbers = #tpu.dot_dimension_numbers<[1], [0], [0], [1], [0, 0, 1, 1], [], []>} : vector<8x32xf32>, vector<32x128xf32>, vector<8x128xf32> -> vector<8x128xf32>
    %54 = arith.addf %52, %53 : vector<8x128xf32>
    %55 = arith.negf %54 : vector<8x128xf32>
    %56 = math.exp %55 : vector<8x128xf32>
    %cst_20 = arith.constant 1.000000e+00 : f32
    %57 = vector.broadcast %cst_20 : f32 to vector<8x128xf32>
    %58 = arith.addf %57, %56 : vector<8x128xf32>
    %59 = arith.divf %57, %58 : vector<8x128xf32>
    %60 = math.tanh %54 : vector<8x128xf32>
    %61 = vector.extract_strided_slice %59 {offsets = [0, 0], sizes = [8, 32], strides = [1, 1]} : vector<8x128xf32> to vector<8x32xf32>
    %62 = vector.extract_strided_slice %59 {offsets = [0, 32], sizes = [8, 32], strides = [1, 1]} : vector<8x128xf32> to vector<8x32xf32>
    %63 = vector.extract_strided_slice %60 {offsets = [0, 64], sizes = [8, 32], strides = [1, 1]} : vector<8x128xf32> to vector<8x32xf32>
    %64 = vector.extract_strided_slice %59 {offsets = [0, 96], sizes = [8, 32], strides = [1, 1]} : vector<8x128xf32> to vector<8x32xf32>
    %65 = arith.mulf %62, %31 : vector<8x32xf32>
    %66 = arith.mulf %61, %63 : vector<8x32xf32>
    %67 = arith.addf %65, %66 : vector<8x32xf32>
    %68 = math.tanh %67 : vector<8x32xf32>
    %69 = arith.mulf %64, %68 : vector<8x32xf32>
    %70 = tpu.concatenate %69, %51 in 1 : vector<8x32xf32>, vector<8x32xf32> -> vector<8x64xf32>
    %cst_21 = arith.constant dense<0.000000e+00> : vector<8x128xf32>
    %71 = tpu.matmul %70, %1, %cst_21 {dimension_numbers = #tpu.dot_dimension_numbers<[1], [0], [0], [1], [0, 0, 1, 1], [], []>} : vector<8x64xf32>, vector<64x128xf32>, vector<8x128xf32> -> vector<8x128xf32>
    %72 = arith.addf %71, %11 : vector<8x128xf32>
    %73 = arith.negf %72 : vector<8x128xf32>
    %74 = math.exp %73 : vector<8x128xf32>
    %cst_22 = arith.constant 1.000000e+00 : f32
    %75 = vector.broadcast %cst_22 : f32 to vector<8x128xf32>
    %76 = arith.addf %75, %74 : vector<8x128xf32>
    %77 = arith.divf %75, %76 : vector<8x128xf32>
    %78 = math.tanh %72 : vector<8x128xf32>
    %79 = vector.extract_strided_slice %77 {offsets = [0, 0], sizes = [8, 32], strides = [1, 1]} : vector<8x128xf32> to vector<8x32xf32>
    %80 = vector.extract_strided_slice %77 {offsets = [0, 32], sizes = [8, 32], strides = [1, 1]} : vector<8x128xf32> to vector<8x32xf32>
    %81 = vector.extract_strided_slice %78 {offsets = [0, 64], sizes = [8, 32], strides = [1, 1]} : vector<8x128xf32> to vector<8x32xf32>
    %82 = vector.extract_strided_slice %77 {offsets = [0, 96], sizes = [8, 32], strides = [1, 1]} : vector<8x128xf32> to vector<8x32xf32>
    %83 = arith.mulf %80, %49 : vector<8x32xf32>
    %84 = arith.mulf %79, %81 : vector<8x32xf32>
    %85 = arith.addf %83, %84 : vector<8x32xf32>
    %86 = math.tanh %85 : vector<8x32xf32>
    %87 = arith.mulf %82, %86 : vector<8x32xf32>
    %88 = vector.extract_strided_slice %8 {offsets = [16, 0], sizes = [8, 128], strides = [1, 1]} : vector<64x128xf32> to vector<8x128xf32>
    %cst_23 = arith.constant dense<0.000000e+00> : vector<8x128xf32>
    %89 = tpu.matmul %69, %0, %cst_23 {dimension_numbers = #tpu.dot_dimension_numbers<[1], [0], [0], [1], [0, 0, 1, 1], [], []>} : vector<8x32xf32>, vector<32x128xf32>, vector<8x128xf32> -> vector<8x128xf32>
    %90 = arith.addf %88, %89 : vector<8x128xf32>
    %91 = arith.negf %90 : vector<8x128xf32>
    %92 = math.exp %91 : vector<8x128xf32>
    %cst_24 = arith.constant 1.000000e+00 : f32
    %93 = vector.broadcast %cst_24 : f32 to vector<8x128xf32>
    %94 = arith.addf %93, %92 : vector<8x128xf32>
    %95 = arith.divf %93, %94 : vector<8x128xf32>
    %96 = math.tanh %90 : vector<8x128xf32>
    %97 = vector.extract_strided_slice %95 {offsets = [0, 0], sizes = [8, 32], strides = [1, 1]} : vector<8x128xf32> to vector<8x32xf32>
    %98 = vector.extract_strided_slice %95 {offsets = [0, 32], sizes = [8, 32], strides = [1, 1]} : vector<8x128xf32> to vector<8x32xf32>
    %99 = vector.extract_strided_slice %96 {offsets = [0, 64], sizes = [8, 32], strides = [1, 1]} : vector<8x128xf32> to vector<8x32xf32>
    %100 = vector.extract_strided_slice %95 {offsets = [0, 96], sizes = [8, 32], strides = [1, 1]} : vector<8x128xf32> to vector<8x32xf32>
    %101 = arith.mulf %98, %67 : vector<8x32xf32>
    %102 = arith.mulf %97, %99 : vector<8x32xf32>
    %103 = arith.addf %101, %102 : vector<8x32xf32>
    %104 = math.tanh %103 : vector<8x32xf32>
    %105 = arith.mulf %100, %104 : vector<8x32xf32>
    %106 = tpu.concatenate %105, %87 in 1 : vector<8x32xf32>, vector<8x32xf32> -> vector<8x64xf32>
    %cst_25 = arith.constant dense<0.000000e+00> : vector<8x128xf32>
    %107 = tpu.matmul %106, %1, %cst_25 {dimension_numbers = #tpu.dot_dimension_numbers<[1], [0], [0], [1], [0, 0, 1, 1], [], []>} : vector<8x64xf32>, vector<64x128xf32>, vector<8x128xf32> -> vector<8x128xf32>
    %108 = arith.addf %107, %11 : vector<8x128xf32>
    %109 = arith.negf %108 : vector<8x128xf32>
    %110 = math.exp %109 : vector<8x128xf32>
    %cst_26 = arith.constant 1.000000e+00 : f32
    %111 = vector.broadcast %cst_26 : f32 to vector<8x128xf32>
    %112 = arith.addf %111, %110 : vector<8x128xf32>
    %113 = arith.divf %111, %112 : vector<8x128xf32>
    %114 = math.tanh %108 : vector<8x128xf32>
    %115 = vector.extract_strided_slice %113 {offsets = [0, 0], sizes = [8, 32], strides = [1, 1]} : vector<8x128xf32> to vector<8x32xf32>
    %116 = vector.extract_strided_slice %113 {offsets = [0, 32], sizes = [8, 32], strides = [1, 1]} : vector<8x128xf32> to vector<8x32xf32>
    %117 = vector.extract_strided_slice %114 {offsets = [0, 64], sizes = [8, 32], strides = [1, 1]} : vector<8x128xf32> to vector<8x32xf32>
    %118 = vector.extract_strided_slice %113 {offsets = [0, 96], sizes = [8, 32], strides = [1, 1]} : vector<8x128xf32> to vector<8x32xf32>
    %119 = arith.mulf %116, %85 : vector<8x32xf32>
    %120 = arith.mulf %115, %117 : vector<8x32xf32>
    %121 = arith.addf %119, %120 : vector<8x32xf32>
    %122 = math.tanh %121 : vector<8x32xf32>
    %123 = arith.mulf %118, %122 : vector<8x32xf32>
    %124 = vector.extract_strided_slice %8 {offsets = [24, 0], sizes = [8, 128], strides = [1, 1]} : vector<64x128xf32> to vector<8x128xf32>
    %cst_27 = arith.constant dense<0.000000e+00> : vector<8x128xf32>
    %125 = tpu.matmul %105, %0, %cst_27 {dimension_numbers = #tpu.dot_dimension_numbers<[1], [0], [0], [1], [0, 0, 1, 1], [], []>} : vector<8x32xf32>, vector<32x128xf32>, vector<8x128xf32> -> vector<8x128xf32>
    %126 = arith.addf %124, %125 : vector<8x128xf32>
    %127 = arith.negf %126 : vector<8x128xf32>
    %128 = math.exp %127 : vector<8x128xf32>
    %cst_28 = arith.constant 1.000000e+00 : f32
    %129 = vector.broadcast %cst_28 : f32 to vector<8x128xf32>
    %130 = arith.addf %129, %128 : vector<8x128xf32>
    %131 = arith.divf %129, %130 : vector<8x128xf32>
    %132 = math.tanh %126 : vector<8x128xf32>
    %133 = vector.extract_strided_slice %131 {offsets = [0, 0], sizes = [8, 32], strides = [1, 1]} : vector<8x128xf32> to vector<8x32xf32>
    %134 = vector.extract_strided_slice %131 {offsets = [0, 32], sizes = [8, 32], strides = [1, 1]} : vector<8x128xf32> to vector<8x32xf32>
    %135 = vector.extract_strided_slice %132 {offsets = [0, 64], sizes = [8, 32], strides = [1, 1]} : vector<8x128xf32> to vector<8x32xf32>
    %136 = vector.extract_strided_slice %131 {offsets = [0, 96], sizes = [8, 32], strides = [1, 1]} : vector<8x128xf32> to vector<8x32xf32>
    %137 = arith.mulf %134, %103 : vector<8x32xf32>
    %138 = arith.mulf %133, %135 : vector<8x32xf32>
    %139 = arith.addf %137, %138 : vector<8x32xf32>
    %140 = math.tanh %139 : vector<8x32xf32>
    %141 = arith.mulf %136, %140 : vector<8x32xf32>
    %142 = tpu.concatenate %141, %123 in 1 : vector<8x32xf32>, vector<8x32xf32> -> vector<8x64xf32>
    %cst_29 = arith.constant dense<0.000000e+00> : vector<8x128xf32>
    %143 = tpu.matmul %142, %1, %cst_29 {dimension_numbers = #tpu.dot_dimension_numbers<[1], [0], [0], [1], [0, 0, 1, 1], [], []>} : vector<8x64xf32>, vector<64x128xf32>, vector<8x128xf32> -> vector<8x128xf32>
    %144 = arith.addf %143, %11 : vector<8x128xf32>
    %145 = arith.negf %144 : vector<8x128xf32>
    %146 = math.exp %145 : vector<8x128xf32>
    %cst_30 = arith.constant 1.000000e+00 : f32
    %147 = vector.broadcast %cst_30 : f32 to vector<8x128xf32>
    %148 = arith.addf %147, %146 : vector<8x128xf32>
    %149 = arith.divf %147, %148 : vector<8x128xf32>
    %150 = math.tanh %144 : vector<8x128xf32>
    %151 = vector.extract_strided_slice %149 {offsets = [0, 0], sizes = [8, 32], strides = [1, 1]} : vector<8x128xf32> to vector<8x32xf32>
    %152 = vector.extract_strided_slice %149 {offsets = [0, 32], sizes = [8, 32], strides = [1, 1]} : vector<8x128xf32> to vector<8x32xf32>
    %153 = vector.extract_strided_slice %150 {offsets = [0, 64], sizes = [8, 32], strides = [1, 1]} : vector<8x128xf32> to vector<8x32xf32>
    %154 = vector.extract_strided_slice %149 {offsets = [0, 96], sizes = [8, 32], strides = [1, 1]} : vector<8x128xf32> to vector<8x32xf32>
    %155 = arith.mulf %152, %121 : vector<8x32xf32>
    %156 = arith.mulf %151, %153 : vector<8x32xf32>
    %157 = arith.addf %155, %156 : vector<8x32xf32>
    %158 = math.tanh %157 : vector<8x32xf32>
    %159 = arith.mulf %154, %158 : vector<8x32xf32>
    %160 = vector.extract_strided_slice %8 {offsets = [32, 0], sizes = [8, 128], strides = [1, 1]} : vector<64x128xf32> to vector<8x128xf32>
    %cst_31 = arith.constant dense<0.000000e+00> : vector<8x128xf32>
    %161 = tpu.matmul %141, %0, %cst_31 {dimension_numbers = #tpu.dot_dimension_numbers<[1], [0], [0], [1], [0, 0, 1, 1], [], []>} : vector<8x32xf32>, vector<32x128xf32>, vector<8x128xf32> -> vector<8x128xf32>
    %162 = arith.addf %160, %161 : vector<8x128xf32>
    %163 = arith.negf %162 : vector<8x128xf32>
    %164 = math.exp %163 : vector<8x128xf32>
    %cst_32 = arith.constant 1.000000e+00 : f32
    %165 = vector.broadcast %cst_32 : f32 to vector<8x128xf32>
    %166 = arith.addf %165, %164 : vector<8x128xf32>
    %167 = arith.divf %165, %166 : vector<8x128xf32>
    %168 = math.tanh %162 : vector<8x128xf32>
    %169 = vector.extract_strided_slice %167 {offsets = [0, 0], sizes = [8, 32], strides = [1, 1]} : vector<8x128xf32> to vector<8x32xf32>
    %170 = vector.extract_strided_slice %167 {offsets = [0, 32], sizes = [8, 32], strides = [1, 1]} : vector<8x128xf32> to vector<8x32xf32>
    %171 = vector.extract_strided_slice %168 {offsets = [0, 64], sizes = [8, 32], strides = [1, 1]} : vector<8x128xf32> to vector<8x32xf32>
    %172 = vector.extract_strided_slice %167 {offsets = [0, 96], sizes = [8, 32], strides = [1, 1]} : vector<8x128xf32> to vector<8x32xf32>
    %173 = arith.mulf %170, %139 : vector<8x32xf32>
    %174 = arith.mulf %169, %171 : vector<8x32xf32>
    %175 = arith.addf %173, %174 : vector<8x32xf32>
    %176 = math.tanh %175 : vector<8x32xf32>
    %177 = arith.mulf %172, %176 : vector<8x32xf32>
    %178 = tpu.concatenate %177, %159 in 1 : vector<8x32xf32>, vector<8x32xf32> -> vector<8x64xf32>
    %cst_33 = arith.constant dense<0.000000e+00> : vector<8x128xf32>
    %179 = tpu.matmul %178, %1, %cst_33 {dimension_numbers = #tpu.dot_dimension_numbers<[1], [0], [0], [1], [0, 0, 1, 1], [], []>} : vector<8x64xf32>, vector<64x128xf32>, vector<8x128xf32> -> vector<8x128xf32>
    %180 = arith.addf %179, %11 : vector<8x128xf32>
    %181 = arith.negf %180 : vector<8x128xf32>
    %182 = math.exp %181 : vector<8x128xf32>
    %cst_34 = arith.constant 1.000000e+00 : f32
    %183 = vector.broadcast %cst_34 : f32 to vector<8x128xf32>
    %184 = arith.addf %183, %182 : vector<8x128xf32>
    %185 = arith.divf %183, %184 : vector<8x128xf32>
    %186 = math.tanh %180 : vector<8x128xf32>
    %187 = vector.extract_strided_slice %185 {offsets = [0, 0], sizes = [8, 32], strides = [1, 1]} : vector<8x128xf32> to vector<8x32xf32>
    %188 = vector.extract_strided_slice %185 {offsets = [0, 32], sizes = [8, 32], strides = [1, 1]} : vector<8x128xf32> to vector<8x32xf32>
    %189 = vector.extract_strided_slice %186 {offsets = [0, 64], sizes = [8, 32], strides = [1, 1]} : vector<8x128xf32> to vector<8x32xf32>
    %190 = vector.extract_strided_slice %185 {offsets = [0, 96], sizes = [8, 32], strides = [1, 1]} : vector<8x128xf32> to vector<8x32xf32>
    %191 = arith.mulf %188, %157 : vector<8x32xf32>
    %192 = arith.mulf %187, %189 : vector<8x32xf32>
    %193 = arith.addf %191, %192 : vector<8x32xf32>
    %194 = math.tanh %193 : vector<8x32xf32>
    %195 = arith.mulf %190, %194 : vector<8x32xf32>
    %196 = vector.extract_strided_slice %8 {offsets = [40, 0], sizes = [8, 128], strides = [1, 1]} : vector<64x128xf32> to vector<8x128xf32>
    %cst_35 = arith.constant dense<0.000000e+00> : vector<8x128xf32>
    %197 = tpu.matmul %177, %0, %cst_35 {dimension_numbers = #tpu.dot_dimension_numbers<[1], [0], [0], [1], [0, 0, 1, 1], [], []>} : vector<8x32xf32>, vector<32x128xf32>, vector<8x128xf32> -> vector<8x128xf32>
    %198 = arith.addf %196, %197 : vector<8x128xf32>
    %199 = arith.negf %198 : vector<8x128xf32>
    %200 = math.exp %199 : vector<8x128xf32>
    %cst_36 = arith.constant 1.000000e+00 : f32
    %201 = vector.broadcast %cst_36 : f32 to vector<8x128xf32>
    %202 = arith.addf %201, %200 : vector<8x128xf32>
    %203 = arith.divf %201, %202 : vector<8x128xf32>
    %204 = math.tanh %198 : vector<8x128xf32>
    %205 = vector.extract_strided_slice %203 {offsets = [0, 0], sizes = [8, 32], strides = [1, 1]} : vector<8x128xf32> to vector<8x32xf32>
    %206 = vector.extract_strided_slice %203 {offsets = [0, 32], sizes = [8, 32], strides = [1, 1]} : vector<8x128xf32> to vector<8x32xf32>
    %207 = vector.extract_strided_slice %204 {offsets = [0, 64], sizes = [8, 32], strides = [1, 1]} : vector<8x128xf32> to vector<8x32xf32>
    %208 = vector.extract_strided_slice %203 {offsets = [0, 96], sizes = [8, 32], strides = [1, 1]} : vector<8x128xf32> to vector<8x32xf32>
    %209 = arith.mulf %206, %175 : vector<8x32xf32>
    %210 = arith.mulf %205, %207 : vector<8x32xf32>
    %211 = arith.addf %209, %210 : vector<8x32xf32>
    %212 = math.tanh %211 : vector<8x32xf32>
    %213 = arith.mulf %208, %212 : vector<8x32xf32>
    %214 = tpu.concatenate %213, %195 in 1 : vector<8x32xf32>, vector<8x32xf32> -> vector<8x64xf32>
    %cst_37 = arith.constant dense<0.000000e+00> : vector<8x128xf32>
    %215 = tpu.matmul %214, %1, %cst_37 {dimension_numbers = #tpu.dot_dimension_numbers<[1], [0], [0], [1], [0, 0, 1, 1], [], []>} : vector<8x64xf32>, vector<64x128xf32>, vector<8x128xf32> -> vector<8x128xf32>
    %216 = arith.addf %215, %11 : vector<8x128xf32>
    %217 = arith.negf %216 : vector<8x128xf32>
    %218 = math.exp %217 : vector<8x128xf32>
    %cst_38 = arith.constant 1.000000e+00 : f32
    %219 = vector.broadcast %cst_38 : f32 to vector<8x128xf32>
    %220 = arith.addf %219, %218 : vector<8x128xf32>
    %221 = arith.divf %219, %220 : vector<8x128xf32>
    %222 = math.tanh %216 : vector<8x128xf32>
    %223 = vector.extract_strided_slice %221 {offsets = [0, 0], sizes = [8, 32], strides = [1, 1]} : vector<8x128xf32> to vector<8x32xf32>
    %224 = vector.extract_strided_slice %221 {offsets = [0, 32], sizes = [8, 32], strides = [1, 1]} : vector<8x128xf32> to vector<8x32xf32>
    %225 = vector.extract_strided_slice %222 {offsets = [0, 64], sizes = [8, 32], strides = [1, 1]} : vector<8x128xf32> to vector<8x32xf32>
    %226 = vector.extract_strided_slice %221 {offsets = [0, 96], sizes = [8, 32], strides = [1, 1]} : vector<8x128xf32> to vector<8x32xf32>
    %227 = arith.mulf %224, %193 : vector<8x32xf32>
    %228 = arith.mulf %223, %225 : vector<8x32xf32>
    %229 = arith.addf %227, %228 : vector<8x32xf32>
    %230 = math.tanh %229 : vector<8x32xf32>
    %231 = arith.mulf %226, %230 : vector<8x32xf32>
    %232 = vector.extract_strided_slice %8 {offsets = [48, 0], sizes = [8, 128], strides = [1, 1]} : vector<64x128xf32> to vector<8x128xf32>
    %cst_39 = arith.constant dense<0.000000e+00> : vector<8x128xf32>
    %233 = tpu.matmul %213, %0, %cst_39 {dimension_numbers = #tpu.dot_dimension_numbers<[1], [0], [0], [1], [0, 0, 1, 1], [], []>} : vector<8x32xf32>, vector<32x128xf32>, vector<8x128xf32> -> vector<8x128xf32>
    %234 = arith.addf %232, %233 : vector<8x128xf32>
    %235 = arith.negf %234 : vector<8x128xf32>
    %236 = math.exp %235 : vector<8x128xf32>
    %cst_40 = arith.constant 1.000000e+00 : f32
    %237 = vector.broadcast %cst_40 : f32 to vector<8x128xf32>
    %238 = arith.addf %237, %236 : vector<8x128xf32>
    %239 = arith.divf %237, %238 : vector<8x128xf32>
    %240 = math.tanh %234 : vector<8x128xf32>
    %241 = vector.extract_strided_slice %239 {offsets = [0, 0], sizes = [8, 32], strides = [1, 1]} : vector<8x128xf32> to vector<8x32xf32>
    %242 = vector.extract_strided_slice %239 {offsets = [0, 32], sizes = [8, 32], strides = [1, 1]} : vector<8x128xf32> to vector<8x32xf32>
    %243 = vector.extract_strided_slice %240 {offsets = [0, 64], sizes = [8, 32], strides = [1, 1]} : vector<8x128xf32> to vector<8x32xf32>
    %244 = vector.extract_strided_slice %239 {offsets = [0, 96], sizes = [8, 32], strides = [1, 1]} : vector<8x128xf32> to vector<8x32xf32>
    %245 = arith.mulf %242, %211 : vector<8x32xf32>
    %246 = arith.mulf %241, %243 : vector<8x32xf32>
    %247 = arith.addf %245, %246 : vector<8x32xf32>
    %248 = math.tanh %247 : vector<8x32xf32>
    %249 = arith.mulf %244, %248 : vector<8x32xf32>
    %250 = tpu.concatenate %249, %231 in 1 : vector<8x32xf32>, vector<8x32xf32> -> vector<8x64xf32>
    %cst_41 = arith.constant dense<0.000000e+00> : vector<8x128xf32>
    %251 = tpu.matmul %250, %1, %cst_41 {dimension_numbers = #tpu.dot_dimension_numbers<[1], [0], [0], [1], [0, 0, 1, 1], [], []>} : vector<8x64xf32>, vector<64x128xf32>, vector<8x128xf32> -> vector<8x128xf32>
    %252 = arith.addf %251, %11 : vector<8x128xf32>
    %253 = arith.negf %252 : vector<8x128xf32>
    %254 = math.exp %253 : vector<8x128xf32>
    %cst_42 = arith.constant 1.000000e+00 : f32
    %255 = vector.broadcast %cst_42 : f32 to vector<8x128xf32>
    %256 = arith.addf %255, %254 : vector<8x128xf32>
    %257 = arith.divf %255, %256 : vector<8x128xf32>
    %258 = math.tanh %252 : vector<8x128xf32>
    %259 = vector.extract_strided_slice %257 {offsets = [0, 0], sizes = [8, 32], strides = [1, 1]} : vector<8x128xf32> to vector<8x32xf32>
    %260 = vector.extract_strided_slice %257 {offsets = [0, 32], sizes = [8, 32], strides = [1, 1]} : vector<8x128xf32> to vector<8x32xf32>
    %261 = vector.extract_strided_slice %258 {offsets = [0, 64], sizes = [8, 32], strides = [1, 1]} : vector<8x128xf32> to vector<8x32xf32>
    %262 = vector.extract_strided_slice %257 {offsets = [0, 96], sizes = [8, 32], strides = [1, 1]} : vector<8x128xf32> to vector<8x32xf32>
    %263 = arith.mulf %260, %229 : vector<8x32xf32>
    %264 = arith.mulf %259, %261 : vector<8x32xf32>
    %265 = arith.addf %263, %264 : vector<8x32xf32>
    %266 = math.tanh %265 : vector<8x32xf32>
    %267 = arith.mulf %262, %266 : vector<8x32xf32>
    %268 = vector.extract_strided_slice %8 {offsets = [56, 0], sizes = [8, 128], strides = [1, 1]} : vector<64x128xf32> to vector<8x128xf32>
    %cst_43 = arith.constant dense<0.000000e+00> : vector<8x128xf32>
    %269 = tpu.matmul %249, %0, %cst_43 {dimension_numbers = #tpu.dot_dimension_numbers<[1], [0], [0], [1], [0, 0, 1, 1], [], []>} : vector<8x32xf32>, vector<32x128xf32>, vector<8x128xf32> -> vector<8x128xf32>
    %270 = arith.addf %268, %269 : vector<8x128xf32>
    %271 = arith.negf %270 : vector<8x128xf32>
    %272 = math.exp %271 : vector<8x128xf32>
    %cst_44 = arith.constant 1.000000e+00 : f32
    %273 = vector.broadcast %cst_44 : f32 to vector<8x128xf32>
    %274 = arith.addf %273, %272 : vector<8x128xf32>
    %275 = arith.divf %273, %274 : vector<8x128xf32>
    %276 = math.tanh %270 : vector<8x128xf32>
    %277 = vector.extract_strided_slice %275 {offsets = [0, 0], sizes = [8, 32], strides = [1, 1]} : vector<8x128xf32> to vector<8x32xf32>
    %278 = vector.extract_strided_slice %275 {offsets = [0, 32], sizes = [8, 32], strides = [1, 1]} : vector<8x128xf32> to vector<8x32xf32>
    %279 = vector.extract_strided_slice %276 {offsets = [0, 64], sizes = [8, 32], strides = [1, 1]} : vector<8x128xf32> to vector<8x32xf32>
    %280 = vector.extract_strided_slice %275 {offsets = [0, 96], sizes = [8, 32], strides = [1, 1]} : vector<8x128xf32> to vector<8x32xf32>
    %281 = arith.mulf %278, %247 : vector<8x32xf32>
    %282 = arith.mulf %277, %279 : vector<8x32xf32>
    %283 = arith.addf %281, %282 : vector<8x32xf32>
    %284 = math.tanh %283 : vector<8x32xf32>
    %285 = arith.mulf %280, %284 : vector<8x32xf32>
    %286 = tpu.concatenate %285, %267 in 1 : vector<8x32xf32>, vector<8x32xf32> -> vector<8x64xf32>
    %cst_45 = arith.constant dense<0.000000e+00> : vector<8x128xf32>
    %287 = tpu.matmul %286, %1, %cst_45 {dimension_numbers = #tpu.dot_dimension_numbers<[1], [0], [0], [1], [0, 0, 1, 1], [], []>} : vector<8x64xf32>, vector<64x128xf32>, vector<8x128xf32> -> vector<8x128xf32>
    %288 = arith.addf %287, %11 : vector<8x128xf32>
    %289 = arith.negf %288 : vector<8x128xf32>
    %290 = math.exp %289 : vector<8x128xf32>
    %cst_46 = arith.constant 1.000000e+00 : f32
    %291 = vector.broadcast %cst_46 : f32 to vector<8x128xf32>
    %292 = arith.addf %291, %290 : vector<8x128xf32>
    %293 = arith.divf %291, %292 : vector<8x128xf32>
    %294 = math.tanh %288 : vector<8x128xf32>
    %295 = vector.extract_strided_slice %293 {offsets = [0, 0], sizes = [8, 32], strides = [1, 1]} : vector<8x128xf32> to vector<8x32xf32>
    %296 = vector.extract_strided_slice %293 {offsets = [0, 32], sizes = [8, 32], strides = [1, 1]} : vector<8x128xf32> to vector<8x32xf32>
    %297 = vector.extract_strided_slice %294 {offsets = [0, 64], sizes = [8, 32], strides = [1, 1]} : vector<8x128xf32> to vector<8x32xf32>
    %298 = vector.extract_strided_slice %293 {offsets = [0, 96], sizes = [8, 32], strides = [1, 1]} : vector<8x128xf32> to vector<8x32xf32>
    %299 = arith.mulf %296, %265 : vector<8x32xf32>
    %300 = arith.mulf %295, %297 : vector<8x32xf32>
    %301 = arith.addf %299, %300 : vector<8x32xf32>
    %302 = math.tanh %301 : vector<8x32xf32>
    %303 = arith.mulf %298, %302 : vector<8x32xf32>
    %c0_47 = arith.constant 0 : index
    %c0_48 = arith.constant 0 : index
    %304 = vector.load %arg6[%c0_47, %c0_48] : memref<1x32xf32, #tpu.memory_space<vmem>>, vector<1x32xf32>
    %305 = vector.broadcast %304 : vector<1x32xf32> to vector<8x32xf32>
    %306 = arith.mulf %303, %305 : vector<8x32xf32>
    %cst_49 = arith.constant dense<0.000000e+00> : vector<8xf32>
    %307 = vector.multi_reduction <add>, %306, %cst_49 [1] : vector<8x32xf32> to vector<8xf32>
    %308 = vector.shape_cast %307 : vector<8xf32> to vector<8x1xf32>
    %c0_50 = arith.constant 0 : index
    %c0_51 = arith.constant 0 : index
    %309 = vector.load %arg7[%c0_50, %c0_51] : memref<1x1xf32, #tpu.memory_space<vmem>>, vector<1x1xf32>
    %310 = vector.broadcast %309 : vector<1x1xf32> to vector<8x1xf32>
    %311 = arith.addf %308, %310 : vector<8x1xf32>
    %312 = vector.shape_cast %311 : vector<8x1xf32> to vector<8x1xf32>
    %313 = vector.broadcast %312 : vector<8x1xf32> to vector<8x128xf32>
    %c0_52 = arith.constant 0 : index
    %c0_53 = arith.constant 0 : index
    %314 = vector.load %arg8[%c0_52, %c0_53] : memref<8x128xf32, #tpu.memory_space<vmem>>, vector<8x128xf32>
    tpu.vector_store %arg8[%c0_52, %c0_53], %313 {strides = array<i32>} : memref<8x128xf32, #tpu.memory_space<vmem>>, vector<8x128xf32>,
    return
  }
}

</mosaic_0001>

<bundles_post_ra>
// kernel: lstm_model_forward.1
= control target key start
LH: loop header
LB: loop body
LE: loop exit
PB: predicated region body
PF: predicated region fallthrough
CT: control target
= control target key end

     0   :  { %vm60_vm0 = vcmask 130048   ;;  %v2560_v0 = vmov 0.0|0.0   ;;  %vm2561_vm1 = vmmov 0   ;;  %v2562_v4 = vmov 0.0   ;;  %s2563_s21 = smov 64   ;;  %s2565_s28 = smov 96   ;;  %s3011_s1 = inlined_call_operand.vmem [shape: f32[16,128], index: 1, kind: input, shape index: {}]   ;;  %s3012_s2 = inlined_call_operand.vmem [shape: f32[32,128], index: 2, kind: input, shape index: {}]   ;;  %s3013_s0 = inlined_call_operand.vmem [shape: f32[64,16], index: 0, kind: input, shape index: {}]   ;;  %s3014_s3 = inlined_call_operand.vmem [shape: f32[1,128], index: 3, kind: input, shape index: {}]   ;;  %s3015_s4 = inlined_call_operand.vmem [shape: f32[64,128], index: 4, kind: input, shape index: {}]   ;;  %s3016_s5 = inlined_call_operand.vmem [shape: f32[1,128], index: 5, kind: input, shape index: {}]   ;;  %s3017_s6 = inlined_call_operand.vmem [shape: f32[1,32], index: 6, kind: input, shape index: {}]   ;;  %s3018_s7 = inlined_call_operand.<no memory space> [shape: f32[1,1], index: 7, kind: input, shape index: {}]   ;;  %s3019_s8 = inlined_call_operand.vmem [shape: f32[8,128], index: 8, kind: output, shape index: {}]  }
   0x1   :  { %2280 = vmatprep.subr.bf16.mxu1 %v2560_v0  ;;  %v51_v1 = vld [vmem:[%s3011_s1] sm:$0xff]  ;;  %v52_v2 = vld [vmem:[%s3011_s1 + $0x8] sm:$0xff]  ;;  %2044 = vmatprep.mubr.msk.f32.mxu1 %vm2561_vm1, %v2562_v4  ;;  %v33_v9 = vld [vmem:[%s3012_s2 + $0x10] sm:$0xff]  ;;  %vm197_vm2 = vcmask 261120   ;;  %vm301_vm3 = vcmask 523264  }
   0x2   :  { %v31_v3 = vld [vmem:[%s3012_s2] sm:$0xff]  ;;  %v2276_v5 = vpack.c.bf16 %v52_v2, %v51_v1  ;;  %v32_v6 = vld [vmem:[%s3012_s2 + $0x8] sm:$0xff]  ;;  %v34_v10 = vld [vmem:[%s3012_s2 + $0x18] sm:$0xff] }
   0x3   :  { %v43_v7 = vld [vmem:[%s3013_s0] sm:$0xff]  ;;  %v2630_v8 = vpack.c.bf16 %v32_v6, %v31_v3  ;;  %v44_v11 = vld [vmem:[%s3013_s0 + $0x8] sm:$0xff]  ;;  %v2643_v12 = vpack.c.bf16 %v34_v10, %v33_v9  ;;  %v45_v30 = vld [vmem:[%s3013_s0 + $0x10] sm:$0xff] }
   0x4   :  { %2024 = vmatprep.mubr.msk.f32.mxu0 %vm60_vm0, %v43_v7  ;;  %2277 = vmatprep.subr.bf16.mxu0 %v2276_v5  ;;  %v2656_v13 = vld [vmem:[%s3014_s3] ss:$0 sm:$0xff]  ;;  %s2564_s3 = smov 32   ;;  %v46_v31 = vld [vmem:[%s3013_s0 + $0x18] sm:$0xff]  ;;  %v36_v34 = vld [vmem:[%s3015_s4 + $0x8] sm:$0xff] }
   0x5   :  { %2282 = vmatpush3.bf16.msra.mxu1 %v2630_v8  ;;  %2279 = vmatpush3.bf16.msra.mxu0 %v2276_v5  ;;  %v47_v32 = vld [vmem:[%s3013_s0 + $0x20] sm:$0xff]  ;;  %v37_v35 = vld [vmem:[%s3015_s4 + $0x10] sm:$0xff]  ;;  %v38_v37 = vld [vmem:[%s3015_s4 + $0x18] sm:$0xff] }
   0x6   :  { %2283 = vmatprep.subr.bf16.mxu1 %v2560_v0  ;;  %2286 = vmatprep.subr.bf16.mxu0 %v2560_v0  ;;  %v35_v33 = vld [vmem:[%s3015_s4] sm:$0xff]  ;;  %v48_v38 = vld [vmem:[%s3013_s0 + $0x28] sm:$0xff]  ;;  %v2696_v39 = vpack.c.bf16 %v38_v37, %v37_v35  ;;  %v49_v40 = vld [vmem:[%s3013_s0 + $0x30] sm:$0xff] }
   0x7   :  { %v2685_v36 = vpack.c.bf16 %v36_v34, %v35_v33  ;;  %v39_v41 = vld [vmem:[%s3015_s4 + $0x20] sm:$0xff]  ;;  %v40_v42 = vld [vmem:[%s3015_s4 + $0x28] sm:$0xff]  ;;  %v50_v43 = vld [vmem:[%s3013_s0 + $0x38] sm:$0xff] }
   0x8   :  { %2025 = vmatmul.mubr.msk.f32.vlgmr.msra.gmra.mrb[0].mxu0 %vm60_vm0, %v44_v11  ;;  %v2716_v44 = vpack.c.bf16 %v40_v42, %v39_v41  ;;  %v41_v45 = vld [vmem:[%s3015_s4 + $0x30] sm:$0xff]  ;;  %v42_v46 = vld [vmem:[%s3015_s4 + $0x38] sm:$0xff]  ;;  %v2772_v59 = vld [vmem:[%s3016_s5] ss:$0 sm:$0xff] }
   0x9   :  { %2285 = vmatpush3.bf16.msra.mxu1 %v2643_v12  ;;  %2027 = vmatprep.mubr.msk.f32.mxu0 %vm60_vm0, %v45_v30  ;;  %v2732_v48 = vpack.c.bf16 %v42_v46, %v41_v45 }
   0xa   :  { %2304 = vmatprep.subr.bf16.mxu1 %v2560_v0  ;;  %2288 = vmatpush3.bf16.msra.mxu0 %v2685_v36 }
   0xb   :  { %2289 = vmatprep.subr.bf16.mxu0 %v2560_v0 }
   0xc   :  { %2045 = vmatmul.mubr.f32.vlgmr.msra.gmra.mrb[0].mxu1 %v2562_v4  ;;  %2028 = vmatmul.mubr.msk.f32.gmra.mrb[2].mxu0 %vm60_vm0, %v46_v31 }
   0xd   :  { %2093 = vmatprep.mubr.msk.f32.mxu1 %vm2561_vm1, %v2562_v4  ;;  %2030 = vmatprep.mubr.msk.f32.mxu0 %vm60_vm0, %v47_v32 }
   0xe   :  { %2306 = vmatpush3.bf16.msra.mxu1 %v2685_v36  ;;  %2291 = vmatpush3.bf16.msra.mxu0 %v2696_v39 }
   0xf   :  { %2307 = vmatprep.subr.bf16.mxu1 %v2560_v0  ;;  %2292 = vmatprep.subr.bf16.mxu0 %v2560_v0 }
  0x10   :  { %2031 = vmatmul.mubr.msk.f32.gmra.mrb[4].mxu0 %vm60_vm0, %v48_v38 }
  0x11   :  { %2033 = vmatprep.mubr.msk.f32.mxu0 %vm60_vm0, %v49_v40 }
  0x12   :  { %2309 = vmatpush3.bf16.msra.mxu1 %v2696_v39  ;;  %2294 = vmatpush3.bf16.msra.mxu0 %v2716_v44 }
  0x13   :  { %2310 = vmatprep.subr.bf16.mxu1 %v2560_v0  ;;  %2295 = vmatprep.subr.bf16.mxu0 %v2560_v0 }
  0x14   :  { %2034 = vmatmul.mubr.msk.f32.gmra.mrb[6].mxu0 %vm60_vm0, %v50_v43 }
  0x15   :  { %2063 = vmatprep.mubr.msk.f32.mxu0 %vm2561_vm1, %v2562_v4 }
  0x16   :  { %2312 = vmatpush3.bf16.msra.mxu1 %v2716_v44  ;;  %2297 = vmatpush3.bf16.msra.mxu0 %v2732_v48 }
  0x17   :  { %2313 = vmatprep.subr.bf16.mxu1 %v2560_v0  ;;  %2298 = vmatprep.subr.bf16.mxu0 %v2560_v0 }
  0x1a   :  { %2315 = vmatpush3.bf16.msra.mxu1 %v2732_v48 }
  0x1b   :  { %2334 = vmatprep.subr.bf16.mxu1 %v2560_v0 }
  0xdb   :  { %v2658_v14 = vpop.f32.mrb[0].mxu0 }
  0xdc   :  { %v151_v15 = vpop.f32.mrb[1].mxu0  ;;  %v157_v63 = vadd.f32 %v2658_v14, %v2656_v13 }
  0xdd   :  { %v152_v16 = vadd.f32 %v2656_v13, %v151_v15 }
  0xdf   :  { %v267_v17 = vpop.f32.mrb[0].mxu1  ;;  %v2742_v51 = vpop.f32.mrb[2].mxu0 }
  0xe0   :  { %v271_v18 = vadd.f32 %v267_v17, %v152_v16  ;;  %v2046_v19 = vpop.f32.mrb[1].mxu1  ;;  %v2744_v52 = vpop.f32.mrb[3].mxu0 }
  0xe1   :  { %v162_v38 = vadd.f32 %v2656_v13, %v2744_v52 }
  0xe2   :  { %2432 = vtanh.f32 %v271_v18  ;;  %v1865_v21 = vmul.f32 -1.442695, %v271_v18 }
  0xe3   :  { %v2746_v53 = vpop.f32.mrb[4].mxu0 }
  0xe4   :  { %2434 = vpow2.f32 %v1865_v21  ;;  %v2748_v54 = vpop.f32.mrb[5].mxu0 }
  0xe7   :  { %v2750_v55 = vpop.f32.mrb[6].mxu0 }
  0xe8   :  { %v2752_v56 = vpop.f32.mrb[7].mxu0 }
  0xec   :  { %v2433_v20 = vpop.eup %2432 }
  0xed   :  { %281 = vrot.lane.b32.xlu0 %v2433_v20, %s2563_s21 }
  0xee   :  { %v2435_v22 = vpop.eup %2434 }
  0xef   :  { %v275_v23 = vadd.f32 1.0, %v2435_v22 }
  0xf1   :  { %2436 = vrcp.f32 %v275_v23 }
  0xfb   :  { %v2437_v24 = vpop.eup %2436 }
  0xfc   :  { %v279_v27 = vmul.f32 0.0, %v2437_v24 }
 0x15f   :  { %v282_v25 = vpop.permute.xlu0 %281 }
 0x160   :  { %v284_v26 = vmul.f32 %v2437_v24, %v282_v25 }
 0x162   :  { %286 = vrot.lane.b32.xlu0 %v284_v26, %s2564_s3 }
 0x1d4   :  { %v287_v28 = vpop.permute.xlu0 %286 }
 0x1d5   :  { %v2663_v29 = vadd.f32 %v287_v28, %v279_v27 }
 0x1d7   :  { %2438 = vtanh.f32 %v2663_v29 }
 0x1e1   :  { %v2439_v47 = vpop.eup %2438 }
 0x1e2   :  { %292 = vrot.lane.b32.xlu1 %v2439_v47, %s2563_s21 }
 0x254   :  { %v293_v49 = vpop.permute.xlu1 %292 }
 0x255   :  { %v295_v50 = vmul.f32 %v2437_v24, %v293_v49 }
 0x257   :  { %297 = vrot.lane.b32.xlu1 %v295_v50, %s2564_s3 }
 0x2c9   :  { %v298_v57 = vpop.permute.xlu1 %297 }
 0x2ca   :  { %v300_v58 = vsel %vm197_vm2, %v298_v57, 0.0 }
 0x2cb   :  { %2064 = vmatmul.mubr.msk.f32.vlgmr.msra.gmra.mrb[8].mxu0 %vm301_vm3, %v300_v58 }
 0x2cc   :  { %2300 = vmatpush3.bf16.msra.mxu0 %v2630_v8  ;;  %2074 = vmatprep.mubr.msk.f32.mxu0 %vm2561_vm1, %v2562_v4 }
 0x2cd   :  { %2301 = vmatprep.subr.bf16.mxu0 %v2560_v0 }
 0x2d0   :  { %2303 = vmatpush3.bf16.msra.mxu0 %v2643_v12 }
 0x2d1   :  { %2316 = vmatprep.subr.bf16.mxu0 %v2560_v0 }
 0x2d3   :  { %2075 = vmatmul.mubr.msk.f32.vlgmr.msra.gmra.mrb[10].mxu0 %vm197_vm2, %v298_v57 }
 0x2d4   :  { %2318 = vmatpush3.bf16.msra.mxu0 %v2630_v8  ;;  %2104 = vmatprep.mubr.msk.f32.mxu0 %vm2561_vm1, %v2562_v4 }
 0x2d5   :  { %2319 = vmatprep.subr.bf16.mxu0 %v2560_v0 }
 0x2d8   :  { %2321 = vmatpush3.bf16.msra.mxu0 %v2643_v12 }
 0x2d9   :  { %2322 = vmatprep.subr.bf16.mxu0 %v2560_v0 }
 0x39e   :  { %v371_v60 = vpop.f32.mrb[8].mxu0 }
 0x39f   :  { %v372_v61 = vadd.f32 %v2772_v59, %v371_v60  ;;  %v2065_v62 = vpop.f32.mrb[9].mxu0 }
 0x3a1   :  { %2440 = vtanh.f32 %v372_v61  ;;  %v1867_v7 = vmul.f32 -1.442695, %v372_v61 }
 0x3a6   :  { %v467_v1 = vpop.f32.mrb[10].mxu0 }
 0x3a7   :  { %v471_v2 = vadd.f32 %v467_v1, %v157_v63  ;;  %v2076_v3 = vpop.f32.mrb[11].mxu0 }
 0x3a9   :  { %2442 = vtanh.f32 %v471_v2  ;;  %v1869_v9 = vmul.f32 -1.442695, %v471_v2 }
 0x3aa   :  { %2444 = vpow2.f32 %v1867_v7 }
 0x3ab   :  { %v2441_v5 = vpop.eup %2440  ;;  %2446 = vpow2.f32 %v1869_v9 }
 0x3ac   :  { %384 = vrot.lane.b32.xlu0 %v2441_v5, %s2563_s21 }
 0x3b3   :  { %v2443_v6 = vpop.eup %2442 }
 0x3b4   :  { %481 = vrot.lane.b32.xlu1 %v2443_v6, %s2563_s21  ;;  %v2445_v10 = vpop.eup %2444 }
 0x3b5   :  { %v378_v11 = vadd.f32 1.0, %v2445_v10  ;;  %v2447_v15 = vpop.eup %2446 }
 0x3b6   :  { %v475_v16 = vadd.f32 1.0, %v2447_v15 }
 0x3b7   :  { %2448 = vrcp.f32 %v378_v11 }
 0x3b8   :  { %2450 = vrcp.f32 %v475_v16 }
 0x3c1   :  { %v2449_v14 = vpop.eup %2448 }
 0x3c2   :  { %v2451_v19 = vpop.eup %2450  ;;  %v382_v22 = vmul.f32 0.0, %v2449_v14 }
 0x3c3   :  { %v479_v25 = vmul.f32 %v2451_v19, %v2663_v29 }
 0x41e   :  { %v385_v17 = vpop.permute.xlu0 %384 }
 0x41f   :  { %v387_v18 = vmul.f32 %v2449_v14, %v385_v17 }
 0x421   :  { %389 = vrot.lane.b32.xlu0 %v387_v18, %s2564_s3 }
 0x426   :  { %v482_v20 = vpop.permute.xlu1 %481 }
 0x427   :  { %v484_v21 = vmul.f32 %v2451_v19, %v482_v20 }
 0x429   :  { %486 = vrot.lane.b32.xlu1 %v484_v21, %s2564_s3 }
 0x493   :  { %v390_v23 = vpop.permute.xlu0 %389 }
 0x494   :  { %v2781_v24 = vadd.f32 %v390_v23, %v382_v22 }
 0x496   :  { %2452 = vtanh.f32 %v2781_v24 }
 0x49b   :  { %v487_v26 = vpop.permute.xlu1 %486 }
 0x49c   :  { %v489_v27 = vadd.f32 %v487_v26, %v479_v25 }
 0x49e   :  { %2454 = vtanh.f32 %v489_v27 }
 0x4a0   :  { %v2453_v28 = vpop.eup %2452 }
 0x4a1   :  { %395 = vrot.lane.b32.xlu0 %v2453_v28, %s2563_s21 }
 0x4a8   :  { %v2455_v30 = vpop.eup %2454 }
 0x4a9   :  { %492 = vrot.lane.b32.xlu1 %v2455_v30, %s2563_s21 }
 0x513   :  { %v396_v31 = vpop.permute.xlu0 %395 }
 0x514   :  { %v398_v32 = vmul.f32 %v2449_v14, %v396_v31 }
 0x516   :  { %501 = vrot.lane.b32.xlu1 %v398_v32, %s2563_s21 }
 0x51b   :  { %v493_v33 = vpop.permute.xlu1 %492 }
 0x51c   :  { %v495_v34 = vmul.f32 %v2451_v19, %v493_v33 }
 0x51e   :  { %497 = vrot.lane.b32.xlu0 %v495_v34, %s2564_s3 }
 0x588   :  { %v502_v35 = vpop.permute.xlu1 %501 }
 0x590   :  { %v498_v37 = vpop.permute.xlu0 %497 }
 0x591   :  { %v504_v29 = vsel %vm197_vm2, %v498_v37, %v502_v35  ;;  %2105 = vmatmul.mubr.msk.f32.vlgmr.msra.gmra.mrb[12].mxu0 %vm197_vm2, %v498_v37 }
 0x592   :  { %2094 = vmatmul.mubr.msk.f32.vlgmr.msra.gmra.mrb[2].mxu1 %vm301_vm3, %v504_v29  ;;  %2324 = vmatpush3.bf16.msra.mxu0 %v2685_v36 }
 0x593   :  { %2325 = vmatprep.subr.bf16.mxu0 %v2560_v0  ;;  %2336 = vmatpush3.bf16.msra.mxu1 %v2630_v8 }
 0x594   :  { %2337 = vmatprep.subr.bf16.mxu1 %v2560_v0  ;;  %2134 = vmatprep.mubr.msk.f32.mxu1 %vm2561_vm1, %v2562_v4 }
 0x595   :  { %2123 = vmatprep.mubr.msk.f32.mxu0 %vm2561_vm1, %v2562_v4 }
 0x596   :  { %2327 = vmatpush3.bf16.msra.mxu0 %v2696_v39 }
 0x597   :  { %2328 = vmatprep.subr.bf16.mxu0 %v2560_v0  ;;  %2339 = vmatpush3.bf16.msra.mxu1 %v2643_v12 }
 0x598   :  { %2340 = vmatprep.subr.bf16.mxu1 %v2560_v0 }
 0x59a   :  { %2330 = vmatpush3.bf16.msra.mxu0 %v2716_v44 }
 0x59b   :  { %2331 = vmatprep.subr.bf16.mxu0 %v2560_v0 }
 0x59e   :  { %2333 = vmatpush3.bf16.msra.mxu0 %v2732_v48 }
 0x59f   :  { %2352 = vmatprep.subr.bf16.mxu0 %v2560_v0 }
 0x664   :  { %v670_v40 = vpop.f32.mrb[12].mxu0 }
 0x665   :  { %v674_v41 = vadd.f32 %v670_v40, %v162_v38  ;;  %v574_v42 = vpop.f32.mrb[2].mxu1  ;;  %v2106_v43 = vpop.f32.mrb[13].mxu0 }
 0x666   :  { %v575_v45 = vadd.f32 %v2772_v59, %v574_v42  ;;  %v2095_v46 = vpop.f32.mrb[3].mxu1 }
 0x667   :  { %2456 = vtanh.f32 %v674_v41  ;;  %v1873_v50 = vmul.f32 -1.442695, %v674_v41 }
 0x668   :  { %2458 = vtanh.f32 %v575_v45  ;;  %v1871_v57 = vmul.f32 -1.442695, %v575_v45 }
 0x669   :  { %2460 = vpow2.f32 %v1873_v50 }
 0x66a   :  { %2462 = vpow2.f32 %v1871_v57 }
 0x671   :  { %v2457_v47 = vpop.eup %2456 }
 0x672   :  { %v2459_v49 = vpop.eup %2458  ;;  %684 = vrot.lane.b32.xlu1 %v2457_v47, %s2563_s21 }
 0x673   :  { %587 = vrot.lane.b32.xlu0 %v2459_v49, %s2563_s21  ;;  %v2461_v52 = vpop.eup %2460 }
 0x674   :  { %v2463_v58 = vpop.eup %2462  ;;  %v678_v60 = vadd.f32 1.0, %v2461_v52 }
 0x675   :  { %v581_v61 = vadd.f32 1.0, %v2463_v58 }
 0x676   :  { %2464 = vrcp.f32 %v678_v60 }
 0x677   :  { %2466 = vrcp.f32 %v581_v61 }
 0x680   :  { %v2465_v62 = vpop.eup %2464 }
 0x681   :  { %v2467_v1 = vpop.eup %2466  ;;  %v682_v6 = vmul.f32 %v2465_v62, %v489_v27 }
 0x682   :  { %v585_v9 = vmul.f32 %v2467_v1, %v2781_v24  ;;  %v167_v24 = vadd.f32 %v2742_v51, %v2656_v13 }
 0x6e4   :  { %v685_v63 = vpop.permute.xlu1 %684 }
 0x6e5   :  { %v687_v2 = vmul.f32 %v2465_v62, %v685_v63  ;;  %v588_v3 = vpop.permute.xlu0 %587 }
 0x6e6   :  { %v590_v5 = vmul.f32 %v2467_v1, %v588_v3 }
 0x6e7   :  { %689 = vrot.lane.b32.xlu1 %v687_v2, %s2564_s3 }
 0x6e8   :  { %592 = vrot.lane.b32.xlu0 %v590_v5, %s2564_s3 }
 0x759   :  { %v690_v7 = vpop.permute.xlu1 %689 }
 0x75a   :  { %v2816_v10 = vadd.f32 %v690_v7, %v682_v6  ;;  %v593_v11 = vpop.permute.xlu0 %592  ;;  %v172_v7 = vadd.f32 %v2656_v13, %v2748_v54 }
 0x75b   :  { %v2818_v15 = vadd.f32 %v593_v11, %v585_v9 }
 0x75c   :  { %2468 = vtanh.f32 %v2816_v10 }
 0x75d   :  { %2470 = vtanh.f32 %v2818_v15 }
 0x766   :  { %v2469_v16 = vpop.eup %2468 }
 0x767   :  { %v2471_v14 = vpop.eup %2470  ;;  %695 = vrot.lane.b32.xlu1 %v2469_v16, %s2563_s21 }
 0x768   :  { %598 = vrot.lane.b32.xlu0 %v2471_v14, %s2563_s21 }
 0x7d9   :  { %v696_v17 = vpop.permute.xlu1 %695 }
 0x7da   :  { %v698_v18 = vmul.f32 %v2465_v62, %v696_v17  ;;  %v599_v19 = vpop.permute.xlu0 %598 }
 0x7db   :  { %v601_v20 = vmul.f32 %v2467_v1, %v599_v19 }
 0x7dc   :  { %700 = vrot.lane.b32.xlu0 %v698_v18, %s2564_s3 }
 0x7dd   :  { %704 = vrot.lane.b32.xlu1 %v601_v20, %s2563_s21 }
 0x84e   :  { %v701_v21 = vpop.permute.xlu0 %700 }
 0x84f   :  { %2135 = vmatmul.mubr.msk.f32.vlgmr.msra.gmra.mrb[4].mxu1 %vm197_vm2, %v701_v21  ;;  %v705_v22 = vpop.permute.xlu1 %704 }
 0x850   :  { %v707_v23 = vsel %vm197_vm2, %v701_v21, %v705_v22  ;;  %2342 = vmatpush3.bf16.msra.mxu1 %v2685_v36  ;;  %2153 = vmatprep.mubr.msk.f32.mxu1 %vm2561_vm1, %v2562_v4 }
 0x851   :  { %2124 = vmatmul.mubr.msk.f32.vlgmr.msra.gmra.mrb[14].mxu0 %vm301_vm3, %v707_v23  ;;  %2343 = vmatprep.subr.bf16.mxu1 %v2560_v0 }
 0x852   :  { %2354 = vmatpush3.bf16.msra.mxu0 %v2630_v8  ;;  %2164 = vmatprep.mubr.msk.f32.mxu0 %vm2561_vm1, %v2562_v4 }
 0x853   :  { %2355 = vmatprep.subr.bf16.mxu0 %v2560_v0 }
 0x854   :  { %2345 = vmatpush3.bf16.msra.mxu1 %v2696_v39 }
 0x855   :  { %2346 = vmatprep.subr.bf16.mxu1 %v2560_v0 }
 0x856   :  { %2357 = vmatpush3.bf16.msra.mxu0 %v2643_v12 }
 0x857   :  { %2358 = vmatprep.subr.bf16.mxu0 %v2560_v0 }
 0x858   :  { %2348 = vmatpush3.bf16.msra.mxu1 %v2716_v44 }
 0x859   :  { %2349 = vmatprep.subr.bf16.mxu1 %v2560_v0 }
 0x85c   :  { %2351 = vmatpush3.bf16.msra.mxu1 %v2732_v48 }
 0x85d   :  { %2370 = vmatprep.subr.bf16.mxu1 %v2560_v0 }
 0x922   :  { %v873_v25 = vpop.f32.mrb[4].mxu1 }
 0x923   :  { %v877_v26 = vadd.f32 %v873_v25, %v167_v24  ;;  %v2136_v27 = vpop.f32.mrb[5].mxu1 }
 0x924   :  { %v777_v28 = vpop.f32.mrb[14].mxu0 }
 0x925   :  { %2472 = vtanh.f32 %v877_v26  ;;  %v778_v30 = vadd.f32 %v2772_v59, %v777_v28  ;;  %v2125_v31 = vpop.f32.mrb[15].mxu0  ;;  %v1877_v34 = vmul.f32 -1.442695, %v877_v26 }
 0x927   :  { %2474 = vtanh.f32 %v778_v30  ;;  %v1875_v35 = vmul.f32 -1.442695, %v778_v30 }
 0x928   :  { %2476 = vpow2.f32 %v1877_v34 }
 0x929   :  { %2478 = vpow2.f32 %v1875_v35 }
 0x92f   :  { %v2473_v32 = vpop.eup %2472 }
 0x930   :  { %887 = vrot.lane.b32.xlu1 %v2473_v32, %s2563_s21 }
 0x931   :  { %v2475_v33 = vpop.eup %2474 }
 0x932   :  { %790 = vrot.lane.b32.xlu0 %v2475_v33, %s2563_s21  ;;  %v2477_v51 = vpop.eup %2476 }
 0x933   :  { %v2479_v37 = vpop.eup %2478  ;;  %v881_v29 = vadd.f32 1.0, %v2477_v51 }
 0x934   :  { %v784_v38 = vadd.f32 1.0, %v2479_v37 }
 0x935   :  { %2480 = vrcp.f32 %v881_v29 }
 0x936   :  { %2482 = vrcp.f32 %v784_v38 }
 0x93f   :  { %v2481_v40 = vpop.eup %2480 }
 0x940   :  { %v2483_v43 = vpop.eup %2482  ;;  %v885_v47 = vmul.f32 %v2481_v40, %v2816_v10 }
 0x941   :  { %v788_v57 = vmul.f32 %v2483_v43, %v2818_v15 }
 0x9a2   :  { %v888_v41 = vpop.permute.xlu1 %887 }
 0x9a3   :  { %v890_v42 = vmul.f32 %v2481_v40, %v888_v41 }
 0x9a4   :  { %v791_v45 = vpop.permute.xlu0 %790 }
 0x9a5   :  { %892 = vrot.lane.b32.xlu1 %v890_v42, %s2564_s3  ;;  %v793_v46 = vmul.f32 %v2483_v43, %v791_v45 }
 0x9a7   :  { %795 = vrot.lane.b32.xlu0 %v793_v46, %s2564_s3 }
 0xa17   :  { %v893_v49 = vpop.permute.xlu1 %892 }
 0xa18   :  { %v2853_v50 = vadd.f32 %v893_v49, %v885_v47  ;;  %v177_v47 = vadd.f32 %v2746_v53, %v2656_v13 }
 0xa19   :  { %v796_v52 = vpop.permute.xlu0 %795 }
 0xa1a   :  { %2484 = vtanh.f32 %v2853_v50  ;;  %v2857_v58 = vadd.f32 %v796_v52, %v788_v57 }
 0xa1c   :  { %2486 = vtanh.f32 %v2857_v58 }
 0xa24   :  { %v2485_v60 = vpop.eup %2484 }
 0xa25   :  { %898 = vrot.lane.b32.xlu1 %v2485_v60, %s2563_s21 }
 0xa26   :  { %v2487_v61 = vpop.eup %2486 }
 0xa27   :  { %801 = vrot.lane.b32.xlu0 %v2487_v61, %s2563_s21 }
 0xa97   :  { %v899_v62 = vpop.permute.xlu1 %898 }
 0xa98   :  { %v901_v63 = vmul.f32 %v2481_v40, %v899_v62 }
 0xa99   :  { %v802_v1 = vpop.permute.xlu0 %801 }
 0xa9a   :  { %903 = vrot.lane.b32.xlu0 %v901_v63, %s2564_s3  ;;  %v804_v2 = vmul.f32 %v2483_v43, %v802_v1 }
 0xa9c   :  { %907 = vrot.lane.b32.xlu1 %v804_v2, %s2563_s21 }
 0xb0c   :  { %v904_v3 = vpop.permute.xlu0 %903 }
 0xb0d   :  { %2165 = vmatmul.mubr.msk.f32.vlgmr.msra.gmra.mrb[16].mxu0 %vm197_vm2, %v904_v3 }
 0xb0e   :  { %2360 = vmatpush3.bf16.msra.mxu0 %v2685_v36  ;;  %2183 = vmatprep.mubr.msk.f32.mxu0 %vm2561_vm1, %v2562_v4  ;;  %v908_v5 = vpop.permute.xlu1 %907 }
 0xb0f   :  { %2361 = vmatprep.subr.bf16.mxu0 %v2560_v0  ;;  %v910_v6 = vsel %vm197_vm2, %v904_v3, %v908_v5 }
 0xb10   :  { %2154 = vmatmul.mubr.msk.f32.vlgmr.msra.gmra.mrb[6].mxu1 %vm301_vm3, %v910_v6 }
 0xb11   :  { %2372 = vmatpush3.bf16.msra.mxu1 %v2630_v8  ;;  %2194 = vmatprep.mubr.msk.f32.mxu1 %vm2561_vm1, %v2562_v4 }
 0xb12   :  { %2363 = vmatpush3.bf16.msra.mxu0 %v2696_v39  ;;  %2373 = vmatprep.subr.bf16.mxu1 %v2560_v0 }
 0xb13   :  { %2364 = vmatprep.subr.bf16.mxu0 %v2560_v0 }
 0xb15   :  { %2375 = vmatpush3.bf16.msra.mxu1 %v2643_v12 }
 0xb16   :  { %2366 = vmatpush3.bf16.msra.mxu0 %v2716_v44  ;;  %2376 = vmatprep.subr.bf16.mxu1 %v2560_v0 }
 0xb17   :  { %2367 = vmatprep.subr.bf16.mxu0 %v2560_v0 }
 0xb1a   :  { %2369 = vmatpush3.bf16.msra.mxu0 %v2732_v48 }
 0xb1b   :  { %2388 = vmatprep.subr.bf16.mxu0 %v2560_v0 }
 0xbe0   :  { %v1076_v9 = vpop.f32.mrb[16].mxu0 }
 0xbe1   :  { %v1080_v10 = vadd.f32 %v1076_v9, %v172_v7  ;;  %v2166_v11 = vpop.f32.mrb[17].mxu0 }
 0xbe3   :  { %2488 = vtanh.f32 %v1080_v10  ;;  %v980_v15 = vpop.f32.mrb[6].mxu1  ;;  %v1881_v19 = vmul.f32 -1.442695, %v1080_v10 }
 0xbe4   :  { %v981_v16 = vadd.f32 %v2772_v59, %v980_v15  ;;  %v2155_v14 = vpop.f32.mrb[7].mxu1 }
 0xbe6   :  { %2490 = vtanh.f32 %v981_v16  ;;  %v1879_v20 = vmul.f32 -1.442695, %v981_v16 }
 0xbe7   :  { %2492 = vpow2.f32 %v1881_v19 }
 0xbe8   :  { %2494 = vpow2.f32 %v1879_v20 }
 0xbed   :  { %v2489_v17 = vpop.eup %2488 }
 0xbee   :  { %1090 = vrot.lane.b32.xlu1 %v2489_v17, %s2563_s21 }
 0xbf0   :  { %v2491_v18 = vpop.eup %2490 }
 0xbf1   :  { %993 = vrot.lane.b32.xlu0 %v2491_v18, %s2563_s21  ;;  %v2493_v54 = vpop.eup %2492 }
 0xbf2   :  { %v1084_v21 = vadd.f32 1.0, %v2493_v54  ;;  %v2495_v22 = vpop.eup %2494 }
 0xbf3   :  { %v987_v23 = vadd.f32 1.0, %v2495_v22 }
 0xbf4   :  { %2496 = vrcp.f32 %v1084_v21 }
 0xbf5   :  { %2498 = vrcp.f32 %v987_v23 }
 0xbfe   :  { %v2497_v24 = vpop.eup %2496 }
 0xbff   :  { %v2499_v27 = vpop.eup %2498  ;;  %v1088_v31 = vmul.f32 %v2497_v24, %v2853_v50 }
 0xc00   :  { %v991_v34 = vmul.f32 %v2499_v27, %v2857_v58 }
 0xc60   :  { %v1091_v25 = vpop.permute.xlu1 %1090 }
 0xc61   :  { %v1093_v26 = vmul.f32 %v2497_v24, %v1091_v25 }
 0xc63   :  { %1095 = vrot.lane.b32.xlu1 %v1093_v26, %s2564_s3  ;;  %v994_v28 = vpop.permute.xlu0 %993 }
 0xc64   :  { %v996_v30 = vmul.f32 %v2499_v27, %v994_v28 }
 0xc66   :  { %998 = vrot.lane.b32.xlu0 %v996_v30, %s2564_s3  ;;  %v182_v30 = vadd.f32 %v2656_v13, %v2752_v56 }
 0xcd5   :  { %v1096_v32 = vpop.permute.xlu1 %1095 }
 0xcd6   :  { %v2891_v33 = vadd.f32 %v1096_v32, %v1088_v31 }
 0xcd8   :  { %2500 = vtanh.f32 %v2891_v33  ;;  %v999_v35 = vpop.permute.xlu0 %998 }
 0xcd9   :  { %v2895_v51 = vadd.f32 %v999_v35, %v991_v34 }
 0xcdb   :  { %2502 = vtanh.f32 %v2895_v51 }
 0xce2   :  { %v2501_v37 = vpop.eup %2500 }
 0xce3   :  { %1101 = vrot.lane.b32.xlu1 %v2501_v37, %s2563_s21 }
 0xce5   :  { %v2503_v29 = vpop.eup %2502 }
 0xce6   :  { %1004 = vrot.lane.b32.xlu0 %v2503_v29, %s2563_s21 }
 0xd55   :  { %v1102_v38 = vpop.permute.xlu1 %1101 }
 0xd56   :  { %v1104_v40 = vmul.f32 %v2497_v24, %v1102_v38 }
 0xd58   :  { %1106 = vrot.lane.b32.xlu0 %v1104_v40, %s2564_s3  ;;  %v1005_v41 = vpop.permute.xlu0 %1004 }
 0xd59   :  { %v1007_v42 = vmul.f32 %v2499_v27, %v1005_v41 }
 0xd5b   :  { %1110 = vrot.lane.b32.xlu1 %v1007_v42, %s2563_s21 }
 0xdca   :  { %v1107_v43 = vpop.permute.xlu0 %1106 }
 0xdcb   :  { %2195 = vmatmul.mubr.msk.f32.vlgmr.msra.gmra.mrb[8].mxu1 %vm197_vm2, %v1107_v43 }
 0xdcc   :  { %2378 = vmatpush3.bf16.msra.mxu1 %v2685_v36  ;;  %2213 = vmatprep.mubr.msk.f32.mxu1 %vm2561_vm1, %v2562_v4 }
 0xdcd   :  { %2379 = vmatprep.subr.bf16.mxu1 %v2560_v0  ;;  %v1111_v45 = vpop.permute.xlu1 %1110 }
 0xdce   :  { %v1113_v46 = vsel %vm197_vm2, %v1107_v43, %v1111_v45 }
 0xdcf   :  { %2184 = vmatmul.mubr.msk.f32.vlgmr.msra.gmra.mrb[18].mxu0 %vm301_vm3, %v1113_v46 }
 0xdd0   :  { %2381 = vmatpush3.bf16.msra.mxu1 %v2696_v39  ;;  %2390 = vmatpush3.bf16.msra.mxu0 %v2630_v8 }
 0xdd1   :  { %2382 = vmatprep.subr.bf16.mxu1 %v2560_v0  ;;  %2391 = vmatprep.subr.bf16.mxu0 %v2560_v0 }
 0xdd2   :  { %2224 = vmatprep.mubr.msk.f32.mxu0 %vm2561_vm1, %v2562_v4 }
 0xdd4   :  { %2384 = vmatpush3.bf16.msra.mxu1 %v2716_v44  ;;  %2393 = vmatpush3.bf16.msra.mxu0 %v2643_v12 }
 0xdd5   :  { %2385 = vmatprep.subr.bf16.mxu1 %v2560_v0  ;;  %2394 = vmatprep.subr.bf16.mxu0 %v2560_v0 }
 0xdd8   :  { %2387 = vmatpush3.bf16.msra.mxu1 %v2732_v48 }
 0xdd9   :  { %2406 = vmatprep.subr.bf16.mxu1 %v2560_v0 }
 0xe9e   :  { %v1279_v49 = vpop.f32.mrb[8].mxu1 }
 0xe9f   :  { %v1283_v50 = vadd.f32 %v1279_v49, %v177_v47  ;;  %v2196_v57 = vpop.f32.mrb[9].mxu1 }
 0xea1   :  { %2504 = vtanh.f32 %v1283_v50  ;;  %v1885_v63 = vmul.f32 -1.442695, %v1283_v50 }
 0xea2   :  { %v1183_v52 = vpop.f32.mrb[18].mxu0 }
 0xea3   :  { %v1184_v58 = vadd.f32 %v2772_v59, %v1183_v52  ;;  %v2185_v60 = vpop.f32.mrb[19].mxu0 }
 0xea5   :  { %2506 = vtanh.f32 %v1184_v58  ;;  %v1883_v1 = vmul.f32 -1.442695, %v1184_v58 }
 0xea6   :  { %2508 = vpow2.f32 %v1885_v63 }
 0xea7   :  { %2510 = vpow2.f32 %v1883_v1 }
 0xeab   :  { %v2505_v61 = vpop.eup %2504 }
 0xeac   :  { %1293 = vrot.lane.b32.xlu1 %v2505_v61, %s2563_s21 }
 0xeaf   :  { %v2507_v62 = vpop.eup %2506 }
 0xeb0   :  { %1196 = vrot.lane.b32.xlu0 %v2507_v62, %s2563_s21  ;;  %v2509_v53 = vpop.eup %2508 }
 0xeb1   :  { %v1287_v2 = vadd.f32 1.0, %v2509_v53  ;;  %v2511_v3 = vpop.eup %2510 }
 0xeb2   :  { %v1190_v5 = vadd.f32 1.0, %v2511_v3 }
 0xeb3   :  { %2512 = vrcp.f32 %v1287_v2 }
 0xeb4   :  { %2514 = vrcp.f32 %v1190_v5 }
 0xebd   :  { %v2513_v6 = vpop.eup %2512 }
 0xebe   :  { %v2515_v10 = vpop.eup %2514  ;;  %v1291_v16 = vmul.f32 %v2513_v6, %v2891_v33 }
 0xebf   :  { %v1194_v18 = vmul.f32 %v2515_v10, %v2895_v51 }
 0xf1e   :  { %v1294_v7 = vpop.permute.xlu1 %1293 }
 0xf1f   :  { %v1296_v9 = vmul.f32 %v2513_v6, %v1294_v7 }
 0xf21   :  { %1298 = vrot.lane.b32.xlu1 %v1296_v9, %s2564_s3 }
 0xf22   :  { %v1197_v11 = vpop.permute.xlu0 %1196 }
 0xf23   :  { %v1199_v15 = vmul.f32 %v2515_v10, %v1197_v11 }
 0xf25   :  { %1201 = vrot.lane.b32.xlu0 %v1199_v15, %s2564_s3 }
 0xf93   :  { %v1299_v14 = vpop.permute.xlu1 %1298 }
 0xf94   :  { %v2929_v17 = vadd.f32 %v1299_v14, %v1291_v16 }
 0xf96   :  { %2516 = vtanh.f32 %v2929_v17 }
 0xf97   :  { %v1202_v19 = vpop.permute.xlu0 %1201 }
 0xf98   :  { %v2933_v20 = vadd.f32 %v1202_v19, %v1194_v18 }
 0xf9a   :  { %2518 = vtanh.f32 %v2933_v20 }
 0xfa0   :  { %v2517_v54 = vpop.eup %2516 }
 0xfa1   :  { %1304 = vrot.lane.b32.xlu1 %v2517_v54, %s2563_s21 }
 0xfa4   :  { %v2519_v21 = vpop.eup %2518 }
 0xfa5   :  { %1207 = vrot.lane.b32.xlu0 %v2519_v21, %s2563_s21 }
0x1013   :  { %v1305_v22 = vpop.permute.xlu1 %1304 }
0x1014   :  { %v1307_v23 = vmul.f32 %v2513_v6, %v1305_v22 }
0x1016   :  { %1309 = vrot.lane.b32.xlu0 %v1307_v23, %s2564_s3 }
0x1017   :  { %v1208_v24 = vpop.permute.xlu0 %1207 }
0x1018   :  { %v1210_v25 = vmul.f32 %v2515_v10, %v1208_v24 }
0x101a   :  { %1313 = vrot.lane.b32.xlu1 %v1210_v25, %s2563_s21 }
0x1088   :  { %v1310_v26 = vpop.permute.xlu0 %1309 }
0x1089   :  { %2225 = vmatmul.mubr.msk.f32.vlgmr.msra.gmra.mrb[20].mxu0 %vm197_vm2, %v1310_v26 }
0x108a   :  { %2396 = vmatpush3.bf16.msra.mxu0 %v2685_v36  ;;  %2243 = vmatprep.mubr.msk.f32.mxu0 %vm2561_vm1, %v2562_v4 }
0x108b   :  { %2397 = vmatprep.subr.bf16.mxu0 %v2560_v0 }
0x108c   :  { %v1314_v27 = vpop.permute.xlu1 %1313 }
0x108d   :  { %v1316_v28 = vsel %vm197_vm2, %v1310_v26, %v1314_v27 }
0x108e   :  { %2399 = vmatpush3.bf16.msra.mxu0 %v2696_v39  ;;  %2214 = vmatmul.mubr.msk.f32.vlgmr.msra.gmra.mrb[10].mxu1 %vm301_vm3, %v1316_v28 }
0x108f   :  { %2400 = vmatprep.subr.bf16.mxu0 %v2560_v0  ;;  %2408 = vmatpush3.bf16.msra.mxu1 %v2630_v8 }
0x1090   :  { %2254 = vmatprep.mubr.msk.f32.mxu1 %vm2561_vm1, %v2562_v4  ;;  %2409 = vmatprep.subr.bf16.mxu1 %v2560_v0 }
0x1092   :  { %2402 = vmatpush3.bf16.msra.mxu0 %v2716_v44 }
0x1093   :  { %2403 = vmatprep.subr.bf16.mxu0 %v2560_v0  ;;  %2411 = vmatpush3.bf16.msra.mxu1 %v2643_v12 }
0x1094   :  { %2412 = vmatprep.subr.bf16.mxu1 %v2560_v0 }
0x1096   :  { %2405 = vmatpush3.bf16.msra.mxu0 %v2732_v48 }
0x115c   :  { %v1482_v31 = vpop.f32.mrb[20].mxu0 }
0x115d   :  { %v1486_v8 = vadd.f32 %v1482_v31, %v182_v30  ;;  %v2226_v32 = vpop.f32.mrb[21].mxu0 }
0x115f   :  { %2520 = vtanh.f32 %v1486_v8  ;;  %v1889_v37 = vmul.f32 -1.442695, %v1486_v8 }
0x1161   :  { %v1386_v33 = vpop.f32.mrb[10].mxu1 }
0x1162   :  { %v1387_v34 = vadd.f32 %v2772_v59, %v1386_v33  ;;  %v2215_v35 = vpop.f32.mrb[11].mxu1 }
0x1164   :  { %2522 = vtanh.f32 %v1387_v34  ;;  %v1887_v29 = vmul.f32 -1.442695, %v1387_v34 }
0x1165   :  { %2524 = vpow2.f32 %v1889_v37 }
0x1166   :  { %2526 = vpow2.f32 %v1887_v29 }
0x1169   :  { %v2521_v51 = vpop.eup %2520 }
0x116a   :  { %1496 = vrot.lane.b32.xlu1 %v2521_v51, %s2563_s21 }
0x116e   :  { %v2523_v12 = vpop.eup %2522 }
0x116f   :  { %1399 = vrot.lane.b32.xlu0 %v2523_v12, %s2563_s21  ;;  %v2525_v56 = vpop.eup %2524 }
0x1170   :  { %v1490_v38 = vadd.f32 1.0, %v2525_v56  ;;  %v2527_v40 = vpop.eup %2526 }
0x1171   :  { %v1393_v41 = vadd.f32 1.0, %v2527_v40 }
0x1172   :  { %2528 = vrcp.f32 %v1490_v38 }
0x1173   :  { %2530 = vrcp.f32 %v1393_v41 }
0x117c   :  { %v2529_v42 = vpop.eup %2528 }
0x117d   :  { %v2531_v46 = vpop.eup %2530  ;;  %v1494_v50 = vmul.f32 %v2529_v42, %v2929_v17 }
0x117e   :  { %v1397_v58 = vmul.f32 %v2531_v46, %v2933_v20 }
0x11dc   :  { %v1497_v43 = vpop.permute.xlu1 %1496 }
0x11dd   :  { %v1499_v45 = vmul.f32 %v2529_v42, %v1497_v43 }
0x11df   :  { %1501 = vrot.lane.b32.xlu1 %v1499_v45, %s2564_s3 }
0x11e1   :  { %v1400_v47 = vpop.permute.xlu0 %1399 }
0x11e2   :  { %v1402_v49 = vmul.f32 %v2531_v46, %v1400_v47  ;;  %v1896_v47 = vld [vmem:[%s3017_s6] ss:$0 sm:$0xff] }
0x11e4   :  { %1404 = vrot.lane.b32.xlu0 %v1402_v49, %s2564_s3 }
0x1251   :  { %v1502_v57 = vpop.permute.xlu1 %1501 }
0x1252   :  { %v1504_v52 = vadd.f32 %v1502_v57, %v1494_v50 }
0x1254   :  { %2532 = vtanh.f32 %v1504_v52 }
0x1256   :  { %v1405_v60 = vpop.permute.xlu0 %1404 }
0x1257   :  { %v1407_v61 = vadd.f32 %v1405_v60, %v1397_v58 }
0x1259   :  { %2534 = vtanh.f32 %v1407_v61 }
0x125e   :  { %v2533_v62 = vpop.eup %2532 }
0x125f   :  { %1507 = vrot.lane.b32.xlu1 %v2533_v62, %s2563_s21 }
0x1263   :  { %v2535_v63 = vpop.eup %2534 }
0x1264   :  { %1410 = vrot.lane.b32.xlu0 %v2535_v63, %s2563_s21 }
0x12d1   :  { %v1508_v1 = vpop.permute.xlu1 %1507 }
0x12d2   :  { %v1510_v53 = vmul.f32 %v2529_v42, %v1508_v1 }
0x12d4   :  { %1512 = vrot.lane.b32.xlu0 %v1510_v53, %s2564_s3  ;;  %v2566_v53 = vmov 0  }
0x12d5   :  { %2431 = vset.pattern.permute.xlu0 %v2566_v53 }
0x12d6   :  { %v1411_v2 = vpop.permute.xlu0 %1410 }
0x12d7   :  { %v1413_v3 = vmul.f32 %v2531_v46, %v1411_v2 }
0x12d9   :  { %1516 = vrot.lane.b32.xlu1 %v1413_v3, %s2563_s21 }
0x1346   :  { %v1513_v5 = vpop.permute.xlu0 %1512 }
0x1347   :  { %2255 = vmatmul.mubr.msk.f32.vlgmr.msra.gmra.mrb[12].mxu1 %vm197_vm2, %v1513_v5 }
0x1348   :  { %2414 = vmatpush3.bf16.msra.mxu1 %v2685_v36  ;;  %2273 = vmatprep.mubr.msk.f32.mxu1 %vm2561_vm1, %v2562_v4  ;;  %v187_v4 = vadd.f32 %v2750_v55, %v2656_v13 }
0x1349   :  { %2415 = vmatprep.subr.bf16.mxu1 %v2560_v0 }
0x134b   :  { %v1517_v6 = vpop.permute.xlu1 %1516 }
0x134c   :  { %2417 = vmatpush3.bf16.msra.mxu1 %v2696_v39  ;;  %v1519_v7 = vsel %vm197_vm2, %v1513_v5, %v1517_v6 }
0x134d   :  { %2418 = vmatprep.subr.bf16.mxu1 %v2560_v0  ;;  %2244 = vmatmul.mubr.msk.f32.vlgmr.msra.gmra.mrb[22].mxu0 %vm301_vm3, %v1519_v7 }
0x1350   :  { %2420 = vmatpush3.bf16.msra.mxu1 %v2716_v44 }
0x1351   :  { %2421 = vmatprep.subr.bf16.mxu1 %v2560_v0 }
0x1354   :  { %2423 = vmatpush3.bf16.msra.mxu1 %v2732_v48 }
0x141a   :  { %v1685_v36 = vpop.f32.mrb[12].mxu1 }
0x141b   :  { %v1689_v9 = vadd.f32 %v1685_v36, %v187_v4  ;;  %v2256_v10 = vpop.f32.mrb[13].mxu1 }
0x141d   :  { %2536 = vtanh.f32 %v1689_v9  ;;  %v1893_v0 = vmul.f32 -1.442695, %v1689_v9 }
0x1420   :  { %v1589_v39 = vpop.f32.mrb[22].mxu0 }
0x1421   :  { %v1590_v11 = vadd.f32 %v2772_v59, %v1589_v39  ;;  %v2245_v15 = vpop.f32.mrb[23].mxu0 }
0x1423   :  { %2538 = vtanh.f32 %v1590_v11  ;;  %v1891_v48 = vmul.f32 -1.442695, %v1590_v11 }
0x1424   :  { %2540 = vpow2.f32 %v1893_v0 }
0x1425   :  { %2542 = vpow2.f32 %v1891_v48 }
0x1427   :  { %v2537_v16 = vpop.eup %2536 }
0x1428   :  { %1699 = vrot.lane.b32.xlu1 %v2537_v16, %s2563_s21 }
0x142d   :  { %v2539_v44 = vpop.eup %2538 }
0x142e   :  { %1602 = vrot.lane.b32.xlu0 %v2539_v44, %s2563_s21  ;;  %v2541_v13 = vpop.eup %2540 }
0x142f   :  { %v1693_v55 = vadd.f32 1.0, %v2541_v13  ;;  %v2543_v14 = vpop.eup %2542 }
0x1430   :  { %v1596_v17 = vadd.f32 1.0, %v2543_v14 }
0x1431   :  { %2544 = vrcp.f32 %v1693_v55 }
0x1432   :  { %2546 = vrcp.f32 %v1596_v17 }
0x143b   :  { %v2545_v18 = vpop.eup %2544 }
0x143c   :  { %v2547_v54 = vpop.eup %2546  ;;  %v1697_v23 = vmul.f32 %v2545_v18, %v1504_v52  ;;  %v13_v52 = vstv %s3018_s7 }
0x143d   :  { %v1600_v26 = vmul.f32 %v2547_v54, %v1407_v61  ;;  %14 = vst [vmem:[#allocation2] sm:$0x1] %v13_v52 }
0x1444   :  { %v1897_v2 = vld [vmem:[#allocation2] ss:$0 sm:$0xff] }
0x149a   :  { %v1700_v19 = vpop.permute.xlu1 %1699 }
0x149b   :  { %v1702_v20 = vmul.f32 %v2545_v18, %v1700_v19 }
0x149d   :  { %1704 = vrot.lane.b32.xlu1 %v1702_v20, %s2564_s3 }
0x14a0   :  { %v1603_v21 = vpop.permute.xlu0 %1602 }
0x14a1   :  { %v1605_v22 = vmul.f32 %v2547_v54, %v1603_v21 }
0x14a3   :  { %1607 = vrot.lane.b32.xlu0 %v1605_v22, %s2564_s3 }
0x150f   :  { %v1705_v24 = vpop.permute.xlu1 %1704 }
0x1510   :  { %v1707_v25 = vadd.f32 %v1705_v24, %v1697_v23 }
0x1512   :  { %2548 = vtanh.f32 %v1707_v25 }
0x1515   :  { %v1608_v27 = vpop.permute.xlu0 %1607 }
0x1516   :  { %v1610_v28 = vadd.f32 %v1608_v27, %v1600_v26 }
0x1518   :  { %2550 = vtanh.f32 %v1610_v28 }
0x151c   :  { %v2549_v30 = vpop.eup %2548 }
0x151d   :  { %1710 = vrot.lane.b32.xlu1 %v2549_v30, %s2563_s21 }
0x1522   :  { %v2551_v31 = vpop.eup %2550 }
0x1523   :  { %1613 = vrot.lane.b32.xlu0 %v2551_v31, %s2563_s21 }
0x158f   :  { %v1711_v8 = vpop.permute.xlu1 %1710 }
0x1590   :  { %v1713_v32 = vmul.f32 %v2545_v18, %v1711_v8 }
0x1592   :  { %1715 = vrot.lane.b32.xlu0 %v1713_v32, %s2564_s3 }
0x1595   :  { %v1614_v33 = vpop.permute.xlu0 %1613 }
0x1596   :  { %v1616_v34 = vmul.f32 %v2547_v54, %v1614_v33 }
0x1598   :  { %1719 = vrot.lane.b32.xlu1 %v1616_v34, %s2563_s21 }
0x1604   :  { %v1716_v35 = vpop.permute.xlu0 %1715 }
0x160a   :  { %v1720_v51 = vpop.permute.xlu1 %1719 }
0x160b   :  { %v1722_v12 = vsel %vm197_vm2, %v1716_v35, %v1720_v51 }
0x160c   :  { %2274 = vmatmul.mubr.msk.f32.vlgmr.msra.gmra.mrb[14].mxu1 %vm301_vm3, %v1722_v12 }
0x16df   :  { %v1792_v37 = vpop.f32.mrb[14].mxu1 }
0x16e0   :  { %v1793_v29 = vadd.f32 %v2772_v59, %v1792_v37  ;;  %v2275_v56 = vpop.f32.mrb[15].mxu1 }
0x16e2   :  { %2552 = vtanh.f32 %v1793_v29  ;;  %v1895_v40 = vmul.f32 -1.442695, %v1793_v29 }
0x16e4   :  { %2554 = vpow2.f32 %v1895_v40 }
0x16ec   :  { %v2553_v38 = vpop.eup %2552 }
0x16ed   :  { %1805 = vrot.lane.b32.xlu0 %v2553_v38, %s2563_s21 }
0x16ee   :  { %v2555_v41 = vpop.eup %2554 }
0x16ef   :  { %v1799_v42 = vadd.f32 1.0, %v2555_v41 }
0x16f1   :  { %2556 = vrcp.f32 %v1799_v42 }
0x16fb   :  { %v2557_v43 = vpop.eup %2556 }
0x16fc   :  { %v1803_v59 = vmul.f32 %v2557_v43, %v1610_v28 }
0x175f   :  { %v1806_v45 = vpop.permute.xlu0 %1805 }
0x1760   :  { %v1808_v46 = vmul.f32 %v2557_v43, %v1806_v45 }
0x1762   :  { %1810 = vrot.lane.b32.xlu1 %v1808_v46, %s2564_s3 }
0x1766   :  { %1826 = vrot.lane.b32.xlu1 %v1896_v47, %s2565_s28 }
0x17d4   :  { %v1811_v49 = vpop.permute.xlu1 %1810 }
0x17d5   :  { %v1813_v50 = vadd.f32 %v1811_v49, %v1803_v59 }
0x17d7   :  { %2558 = vtanh.f32 %v1813_v50 }
0x17d8   :  { %v1827_v60 = vpop.permute.xlu1 %1826 }
0x17e1   :  { %v2559_v57 = vpop.eup %2558 }
0x17e2   :  { %1816 = vrot.lane.b32.xlu0 %v2559_v57, %s2563_s21 }
0x1854   :  { %v1817_v58 = vpop.permute.xlu0 %1816 }
0x1855   :  { %v1819_v61 = vmul.f32 %v2557_v43, %v1817_v58 }
0x1857   :  { %v1829_v62 = vmul.f32 %v1827_v60, %v1819_v61 }
0x1859   :  { %1831 = vrot.lane.b32.xlu0 %v1829_v62, %s2564_s3 }
0x18cb   :  { %v1832_v63 = vpop.permute.xlu0 %1831 }
0x18cc   :  { %v1834_v1 = vsel %vm197_vm2, %v1832_v63, 0.0 }
0x18cd   :  { %1835 = vadd.xlane.f32.xlu1 %v1834_v1 }
0x195a   :  { %v1836_v3 = vpop.xlane.xlu1 %1835 }
0x195b   :  { %v1844_v5 = vadd.f32 %v1897_v2, %v1836_v3 }
0x195d   :  { %1847 = vperm.xlu0 %2431, %v1844_v5  }
0x19dc   :  { %v1848_v6 = vpop.permute.xlu0 %1847 }
0x19dd   :  { %1850 = vst [vmem:[%s3019_s8] sm:$0xff] %v1848_v6 }

</bundles_post_ra>
